<compile_context>
chip_gen: v7x
topology: tpu7x:2x2x1
jax: 0.10.0
libtpu: 0.0.40
codegen_flags: <defaults>
</compile_context>

<pallas_src>
import functools

import jax
import jax.numpy as jnp
from jax.experimental import pallas as pl
from jax.experimental.pallas import tpu as pltpu

_SQRT_HALF = 0.7071067811865476


def _gelu_exact_f32(x):
    # Exact GELU: x * 0.5 * (1 + erf(x / sqrt(2))).
    # erf via Abramowitz & Stegun 7.1.26 (|err| <= 1.5e-7); EUP handles the exp, the
    # polynomial is plain VPU work and stays off the critical MXU/DMA path.
    z = x * jnp.float32(_SQRT_HALF)
    a = jnp.abs(z)
    t = 1.0 / (1.0 + jnp.float32(0.3275911) * a)
    poly = t * (jnp.float32(0.254829592)
                + t * (jnp.float32(-0.284496736)
                + t * (jnp.float32(1.421413741)
                + t * (jnp.float32(-1.453152027)
                + t * jnp.float32(1.061405429)))))
    erf_abs = 1.0 - poly * jnp.exp(-a * a)
    erf_z = jnp.where(z < 0.0, -erf_abs, erf_abs)
    return x * 0.5 * (1.0 + erf_z)


def _resblock_kernel(x_ref, gamma_ref, beta_ref, w1_ref, b1_ref, w2_ref, b2_ref,
                     o_ref, *, eps):
    # Hoisted parameter loads: cast to f32 once per grid step.
    gamma = gamma_ref[...].astype(jnp.float32)
    beta = beta_ref[...].astype(jnp.float32)
    b1 = b1_ref[...].astype(jnp.float32)
    b2 = b2_ref[...].astype(jnp.float32)

    # LayerNorm over channels; single-pass statistics in f32.
    x = x_ref[...].astype(jnp.float32)
    inv_c = jnp.float32(1.0 / x.shape[-1])
    s = jnp.sum(x, axis=-1, keepdims=True)
    sq = jnp.sum(x * x, axis=-1, keepdims=True)
    mean = s * inv_c
    var = jnp.maximum(sq * inv_c - mean * mean, 0.0)
    xn = (x - mean) * jax.lax.rsqrt(var + eps)
    xn = xn * gamma + beta

    # proj = Linear -> GELU -> Linear.  MXU operands in the weight dtype with f32
    # accumulation; weights are VMEM-resident (constant index_map).
    w1 = w1_ref[...]
    w2 = w2_ref[...]
    h = jnp.dot(xn.astype(w1.dtype), w1, preferred_element_type=jnp.float32) + b1
    h = _gelu_exact_f32(h)
    y = jnp.dot(h.astype(w2.dtype), w2, preferred_element_type=jnp.float32) + b2

    # Residual: LayerNorm output + projection output.
    o_ref[...] = (xn + y).astype(o_ref.dtype)


def simple_res_block(x, gamma, beta, w1, b1, w2, b2, *, eps=1e-5, tm=256,
                     vmem_limit_bytes=None):
    """x: (..., C). gamma/beta/b1/b2: (C,). w1/w2: (C, C) stored as (in, out)."""
    orig_shape = x.shape
    c = orig_shape[-1]
    x2d = x.reshape(-1, c)
    n = x2d.shape[0]

    # Row tile: large enough to fill the MXU and amortize per-step overhead, but keep
    # >= 2 grid steps when possible so parallel grid sharding has work.  Multiple of 8.
    tm = max(8, (min(int(tm), max(8, n // 2)) // 8) * 8)

    # Pad the row count up to a tile multiple (padded zero rows are numerically benign
    # under LayerNorm and are sliced off the output).
    n_pad = pl.cdiv(n, tm) * tm
    if n_pad != n:
        x2d = jnp.pad(x2d, ((0, n_pad - n), (0, 0)))

    # Present vectors as (1, C) tiles for a clean lane layout.
    gamma2 = gamma.reshape(1, c)
    beta2 = beta.reshape(1, c)
    b1_2 = b1.reshape(1, c)
    b2_2 = b2.reshape(1, c)

    if vmem_limit_bytes is None:
        # Double-buffered I/O tiles + (once-DMA'd, double-buffered) weights + headroom
        # for f32 temporaries; clamp to 64 MiB (safe on every generation incl. v7x).
        io_bytes = 2 * tm * c * 2 * x2d.dtype.itemsize
        w_bytes = 2 * (w1.size * w1.dtype.itemsize + w2.size * w2.dtype.itemsize)
        vec_bytes = 2 * 4 * c * 4
        tmp_bytes = 4 * tm * c * 4
        est = int((io_bytes + w_bytes + vec_bytes + tmp_bytes) * 1.5)
        vmem_limit_bytes = min(max(est, 32 << 20), 64 << 20)

    kernel = functools.partial(_resblock_kernel, eps=eps)

    out = pl.pallas_call(
        kernel,
        out_shape=jax.ShapeDtypeStruct((n_pad, c), x.dtype),
        grid_spec=pltpu.PrefetchScalarGridSpec(
            num_scalar_prefetch=0,
            grid=(n_pad // tm,),
            in_specs=[
                pl.BlockSpec((tm, c), lambda i: (i, 0)),   # x rows
                pl.BlockSpec((1, c), lambda i: (0, 0)),    # gamma
                pl.BlockSpec((1, c), lambda i: (0, 0)),    # beta
                pl.BlockSpec((c, c), lambda i: (0, 0)),    # w1 (in, out)
                pl.BlockSpec((1, c), lambda i: (0, 0)),    # b1
                pl.BlockSpec((c, c), lambda i: (0, 0)),    # w2 (in, out)
                pl.BlockSpec((1, c), lambda i: (0, 0)),    # b2
            ],
            out_specs=pl.BlockSpec((tm, c), lambda i: (i, 0)),
        ),
        compiler_params=pltpu.CompilerParams(
            dimension_semantics=("parallel",),
            vmem_limit_bytes=vmem_limit_bytes),
    )(x2d, gamma2, beta2, w1, b1_2, w2, b2_2)

    if n_pad != n:
        out = out[:n]
    return out.reshape(orig_shape)


def _reference(x, gamma, beta, w1, b1, w2, b2, eps=1e-5):
    xf = x.astype(jnp.float32)
    mean = jnp.mean(xf, axis=-1, keepdims=True)
    var = jnp.mean((xf - mean) ** 2, axis=-1, keepdims=True)
    xn = (xf - mean) * jax.lax.rsqrt(var + eps) * gamma + beta
    hp = jax.lax.Precision.HIGHEST
    h = jax.nn.gelu(jnp.dot(xn, w1, precision=hp) + b1, approximate=False)
    y = jnp.dot(h, w2, precision=hp) + b2
    return (xn + y).astype(x.dtype)


if __name__ == "__main__":
    key = jax.random.PRNGKey(0)
    # Lane-dense channel width (multiple of 128); seq chosen so the row count (200)
    # exercises the ragged-tail padding path (tm -> 96, grid of 3 steps).
    batch, seq, channels = 2, 100, 256

    k_x, k_g, k_b, k_w1, k_b1, k_w2, k_b2 = jax.random.split(key, 7)
    x = jax.random.normal(k_x, (batch, seq, channels), dtype=jnp.float32)

    # PyTorch Linear weight is (out, in); we store the transpose (in, out) so the
    # kernel computes x @ W directly.
    gamma = 1.0 + 0.1 * jax.random.normal(k_g, (channels,), dtype=jnp.float32)
    beta = 0.1 * jax.random.normal(k_b, (channels,), dtype=jnp.float32)
    w1 = jax.random.normal(k_w1, (channels, channels), dtype=jnp.float32) / jnp.sqrt(channels)
    b1 = 0.05 * jax.random.normal(k_b1, (channels,), dtype=jnp.float32)
    w2 = jax.random.normal(k_w2, (channels, channels), dtype=jnp.float32) / jnp.sqrt(channels)
    b2 = 0.05 * jax.random.normal(k_b2, (channels,), dtype=jnp.float32)

    out = simple_res_block(x, gamma, beta, w1, b1, w2, b2)
    out = jax.block_until_ready(out)

    ref = _reference(x, gamma, beta, w1, b1, w2, b2)
    assert out.shape == x.shape
    assert bool(jnp.allclose(out, ref, atol=1e-2, rtol=1e-2)), "mismatch vs reference"

    print("KERNEL_OK")
</pallas_src>

<mosaic_0001>
module attributes {stable_mosaic.version = 11 : i64} {
  func.func @_resblock_kernel(%arg0: i32, %arg1: memref<96x256xf32, #tpu.memory_space<vmem>>, %arg2: memref<1x256xf32, #tpu.memory_space<vmem>>, %arg3: memref<1x256xf32, #tpu.memory_space<vmem>>, %arg4: memref<256x256xf32, #tpu.memory_space<vmem>>, %arg5: memref<1x256xf32, #tpu.memory_space<vmem>>, %arg6: memref<256x256xf32, #tpu.memory_space<vmem>>, %arg7: memref<1x256xf32, #tpu.memory_space<vmem>>, %arg8: memref<96x256xf32, #tpu.memory_space<vmem>>) attributes {dimension_semantics = [#tpu.dimension_semantics<parallel>], iteration_bounds = array<i64: 3>, scalar_prefetch = 0 : i64, scratch_operands = 0 : i64, tpu.core_type = #tpu.core_type<tc>, window_params = [{transform_indices = @transform_0, window_bounds = array<i64: 96, 256>}, {pipeline_mode = #tpu.pipeline_mode<synchronous>, transform_indices = @transform_1, window_bounds = array<i64: 1, 256>}, {pipeline_mode = #tpu.pipeline_mode<synchronous>, transform_indices = @transform_2, window_bounds = array<i64: 1, 256>}, {pipeline_mode = #tpu.pipeline_mode<synchronous>, transform_indices = @transform_3, window_bounds = array<i64: 256, 256>}, {pipeline_mode = #tpu.pipeline_mode<synchronous>, transform_indices = @transform_4, window_bounds = array<i64: 1, 256>}, {pipeline_mode = #tpu.pipeline_mode<synchronous>, transform_indices = @transform_5, window_bounds = array<i64: 256, 256>}, {pipeline_mode = #tpu.pipeline_mode<synchronous>, transform_indices = @transform_6, window_bounds = array<i64: 1, 256>}, {transform_indices = @transform_7, window_bounds = array<i64: 96, 256>}]} {
    %c0 = arith.constant 0 : index
    %c0_0 = arith.constant 0 : index
    %0 = vector.load %arg2[%c0, %c0_0] : memref<1x256xf32, #tpu.memory_space<vmem>>, vector<1x256xf32>
    %c0_1 = arith.constant 0 : index
    %c0_2 = arith.constant 0 : index
    %1 = vector.load %arg3[%c0_1, %c0_2] : memref<1x256xf32, #tpu.memory_space<vmem>>, vector<1x256xf32>
    %c0_3 = arith.constant 0 : index
    %c0_4 = arith.constant 0 : index
    %2 = vector.load %arg5[%c0_3, %c0_4] : memref<1x256xf32, #tpu.memory_space<vmem>>, vector<1x256xf32>
    %c0_5 = arith.constant 0 : index
    %c0_6 = arith.constant 0 : index
    %3 = vector.load %arg7[%c0_5, %c0_6] : memref<1x256xf32, #tpu.memory_space<vmem>>, vector<1x256xf32>
    %c0_7 = arith.constant 0 : index
    %c0_8 = arith.constant 0 : index
    %4 = vector.load %arg1[%c0_7, %c0_8] : memref<96x256xf32, #tpu.memory_space<vmem>>, vector<96x256xf32>
    %cst = arith.constant dense<0.000000e+00> : vector<96xf32>
    %5 = vector.multi_reduction <add>, %4, %cst [1] : vector<96x256xf32> to vector<96xf32>
    %6 = vector.shape_cast %5 : vector<96xf32> to vector<96x1xf32>
    %7 = arith.mulf %4, %4 : vector<96x256xf32>
    %cst_9 = arith.constant dense<0.000000e+00> : vector<96xf32>
    %8 = vector.multi_reduction <add>, %7, %cst_9 [1] : vector<96x256xf32> to vector<96xf32>
    %9 = vector.shape_cast %8 : vector<96xf32> to vector<96x1xf32>
    %cst_10 = arith.constant 3.906250e-03 : f32
    %10 = vector.broadcast %cst_10 : f32 to vector<96x1xf32>
    %11 = arith.mulf %6, %10 : vector<96x1xf32>
    %cst_11 = arith.constant 3.906250e-03 : f32
    %12 = vector.broadcast %cst_11 : f32 to vector<96x1xf32>
    %13 = arith.mulf %9, %12 : vector<96x1xf32>
    %14 = arith.mulf %11, %11 : vector<96x1xf32>
    %15 = arith.subf %13, %14 : vector<96x1xf32>
    %cst_12 = arith.constant 0.000000e+00 : f32
    %16 = vector.broadcast %cst_12 : f32 to vector<96x1xf32>
    %17 = arith.maximumf %15, %16 : vector<96x1xf32>
    %18 = vector.broadcast %11 : vector<96x1xf32> to vector<96x256xf32>
    %19 = arith.subf %4, %18 : vector<96x256xf32>
    %cst_13 = arith.constant 9.99999974E-6 : f32
    %20 = vector.broadcast %cst_13 : f32 to vector<96x1xf32>
    %21 = arith.addf %17, %20 : vector<96x1xf32>
    %22 = math.rsqrt %21 : vector<96x1xf32>
    %23 = vector.broadcast %22 : vector<96x1xf32> to vector<96x256xf32>
    %24 = arith.mulf %19, %23 : vector<96x256xf32>
    %25 = vector.broadcast %0 : vector<1x256xf32> to vector<96x256xf32>
    %26 = arith.mulf %24, %25 : vector<96x256xf32>
    %27 = vector.broadcast %1 : vector<1x256xf32> to vector<96x256xf32>
    %28 = arith.addf %26, %27 : vector<96x256xf32>
    %c0_14 = arith.constant 0 : index
    %c0_15 = arith.constant 0 : index
    %29 = vector.load %arg4[%c0_14, %c0_15] : memref<256x256xf32, #tpu.memory_space<vmem>>, vector<256x256xf32>
    %c0_16 = arith.constant 0 : index
    %c0_17 = arith.constant 0 : index
    %30 = vector.load %arg6[%c0_16, %c0_17] : memref<256x256xf32, #tpu.memory_space<vmem>>, vector<256x256xf32>
    %cst_18 = arith.constant dense<0.000000e+00> : vector<96x256xf32>
    %31 = tpu.matmul %28, %29, %cst_18 {dimension_numbers = #tpu.dot_dimension_numbers<[1], [0], [0], [1], [0, 0, 1, 1], [], []>} : vector<96x256xf32>, vector<256x256xf32>, vector<96x256xf32> -> vector<96x256xf32>
    %32 = vector.broadcast %2 : vector<1x256xf32> to vector<96x256xf32>
    %33 = arith.addf %31, %32 : vector<96x256xf32>
    %cst_19 = arith.constant 0.707106769 : f32
    %34 = vector.broadcast %cst_19 : f32 to vector<96x256xf32>
    %35 = arith.mulf %33, %34 : vector<96x256xf32>
    %36 = math.absf %35 : vector<96x256xf32>
    %cst_20 = arith.constant 0.327591091 : f32
    %37 = vector.broadcast %cst_20 : f32 to vector<96x256xf32>
    %38 = arith.mulf %37, %36 : vector<96x256xf32>
    %cst_21 = arith.constant 1.000000e+00 : f32
    %39 = vector.broadcast %cst_21 : f32 to vector<96x256xf32>
    %40 = arith.addf %39, %38 : vector<96x256xf32>
    %cst_22 = arith.constant 1.000000e+00 : f32
    %41 = vector.broadcast %cst_22 : f32 to vector<96x256xf32>
    %42 = arith.divf %41, %40 : vector<96x256xf32>
    %cst_23 = arith.constant 1.06140542 : f32
    %43 = vector.broadcast %cst_23 : f32 to vector<96x256xf32>
    %44 = arith.mulf %42, %43 : vector<96x256xf32>
    %cst_24 = arith.constant -1.45315206 : f32
    %45 = vector.broadcast %cst_24 : f32 to vector<96x256xf32>
    %46 = arith.addf %45, %44 : vector<96x256xf32>
    %47 = arith.mulf %42, %46 : vector<96x256xf32>
    %cst_25 = arith.constant 1.42141378 : f32
    %48 = vector.broadcast %cst_25 : f32 to vector<96x256xf32>
    %49 = arith.addf %48, %47 : vector<96x256xf32>
    %50 = arith.mulf %42, %49 : vector<96x256xf32>
    %cst_26 = arith.constant -0.284496725 : f32
    %51 = vector.broadcast %cst_26 : f32 to vector<96x256xf32>
    %52 = arith.addf %51, %50 : vector<96x256xf32>
    %53 = arith.mulf %42, %52 : vector<96x256xf32>
    %cst_27 = arith.constant 0.254829586 : f32
    %54 = vector.broadcast %cst_27 : f32 to vector<96x256xf32>
    %55 = arith.addf %54, %53 : vector<96x256xf32>
    %56 = arith.mulf %42, %55 : vector<96x256xf32>
    %cst_28 = arith.constant 0.000000e+00 : f32
    %57 = vector.broadcast %cst_28 : f32 to vector<96x256xf32>
    %58 = arith.subf %57, %36 : vector<96x256xf32>
    %59 = arith.mulf %58, %36 : vector<96x256xf32>
    %60 = math.exp %59 : vector<96x256xf32>
    %61 = arith.mulf %56, %60 : vector<96x256xf32>
    %cst_29 = arith.constant 1.000000e+00 : f32
    %62 = vector.broadcast %cst_29 : f32 to vector<96x256xf32>
    %63 = arith.subf %62, %61 : vector<96x256xf32>
    %cst_30 = arith.constant 0.000000e+00 : f32
    %64 = vector.broadcast %cst_30 : f32 to vector<96x256xf32>
    %65 = arith.cmpf olt, %35, %64 : vector<96x256xf32>
    %cst_31 = arith.constant 0.000000e+00 : f32
    %66 = vector.broadcast %cst_31 : f32 to vector<96x256xf32>
    %67 = arith.subf %66, %63 : vector<96x256xf32>
    %68 = arith.select %65, %67, %63 : vector<96x256xi1>, vector<96x256xf32>
    %cst_32 = arith.constant 5.000000e-01 : f32
    %69 = vector.broadcast %cst_32 : f32 to vector<96x256xf32>
    %70 = arith.mulf %33, %69 : vector<96x256xf32>
    %cst_33 = arith.constant 1.000000e+00 : f32
    %71 = vector.broadcast %cst_33 : f32 to vector<96x256xf32>
    %72 = arith.addf %71, %68 : vector<96x256xf32>
    %73 = arith.mulf %70, %72 : vector<96x256xf32>
    %cst_34 = arith.constant dense<0.000000e+00> : vector<96x256xf32>
    %74 = tpu.matmul %73, %30, %cst_34 {dimension_numbers = #tpu.dot_dimension_numbers<[1], [0], [0], [1], [0, 0, 1, 1], [], []>} : vector<96x256xf32>, vector<256x256xf32>, vector<96x256xf32> -> vector<96x256xf32>
    %75 = vector.broadcast %3 : vector<1x256xf32> to vector<96x256xf32>
    %76 = arith.addf %74, %75 : vector<96x256xf32>
    %77 = arith.addf %28, %76 : vector<96x256xf32>
    %c0_35 = arith.constant 0 : index
    %c0_36 = arith.constant 0 : index
    %78 = vector.load %arg8[%c0_35, %c0_36] : memref<96x256xf32, #tpu.memory_space<vmem>>, vector<96x256xf32>
    tpu.vector_store %arg8[%c0_35, %c0_36], %77 {strides = array<i32>} : memref<96x256xf32, #tpu.memory_space<vmem>>, vector<96x256xf32>,
    return
  }
  func.func @transform_0(%arg0: i32) -> (i32, i32) {
    %c0_i32 = arith.constant 0 : i32
    %c0_i32_0 = arith.constant 0 : i32
    return %arg0, %c0_i32 : i32, i32
  }
  func.func @transform_1(%arg0: i32) -> (i32, i32) {
    %c0_i32 = arith.constant 0 : i32
    %c0_i32_0 = arith.constant 0 : i32
    %c0_i32_1 = arith.constant 0 : i32
    return %c0_i32, %c0_i32_0 : i32, i32
  }
  func.func @transform_2(%arg0: i32) -> (i32, i32) {
    %c0_i32 = arith.constant 0 : i32
    %c0_i32_0 = arith.constant 0 : i32
    %c0_i32_1 = arith.constant 0 : i32
    return %c0_i32, %c0_i32_0 : i32, i32
  }
  func.func @transform_3(%arg0: i32) -> (i32, i32) {
    %c0_i32 = arith.constant 0 : i32
    %c0_i32_0 = arith.constant 0 : i32
    %c0_i32_1 = arith.constant 0 : i32
    return %c0_i32, %c0_i32_0 : i32, i32
  }
  func.func @transform_4(%arg0: i32) -> (i32, i32) {
    %c0_i32 = arith.constant 0 : i32
    %c0_i32_0 = arith.constant 0 : i32
    %c0_i32_1 = arith.constant 0 : i32
    return %c0_i32, %c0_i32_0 : i32, i32
  }
  func.func @transform_5(%arg0: i32) -> (i32, i32) {
    %c0_i32 = arith.constant 0 : i32
    %c0_i32_0 = arith.constant 0 : i32
    %c0_i32_1 = arith.constant 0 : i32
    return %c0_i32, %c0_i32_0 : i32, i32
  }
  func.func @transform_6(%arg0: i32) -> (i32, i32) {
    %c0_i32 = arith.constant 0 : i32
    %c0_i32_0 = arith.constant 0 : i32
    %c0_i32_1 = arith.constant 0 : i32
    return %c0_i32, %c0_i32_0 : i32, i32
  }
  func.func @transform_7(%arg0: i32) -> (i32, i32) {
    %c0_i32 = arith.constant 0 : i32
    %c0_i32_0 = arith.constant 0 : i32
    return %arg0, %c0_i32 : i32, i32
  }
}

</mosaic_0001>

<bundles_post_ra>
// kernel: tpu_custom_call.1
= control target key start
LH: loop header
LB: loop body
LE: loop exit
PB: predicated region body
PF: predicated region fallthrough
CT: control target
= control target key end

     0   :  { %s3687_s0 = inlined_call_operand.hbm [shape: f32[288,256], index: 0, kind: input, shape index: {}]   ;;  %s3688_s1 = inlined_call_operand.vmem [shape: f32[1,256], index: 1, kind: input, shape index: {}]   ;;  %s3689_s2 = inlined_call_operand.vmem [shape: f32[1,256], index: 2, kind: input, shape index: {}]   ;;  %s3690_s3 = inlined_call_operand.hbm [shape: f32[256,256], index: 3, kind: input, shape index: {}]   ;;  %s3691_s4 = inlined_call_operand.vmem [shape: f32[1,256], index: 4, kind: input, shape index: {}]   ;;  %s3692_s5 = inlined_call_operand.hbm [shape: f32[256,256], index: 5, kind: input, shape index: {}]   ;;  %s3693_s6 = inlined_call_operand.vmem [shape: f32[1,256], index: 6, kind: input, shape index: {}]   ;;  %s3694_s7 = inlined_call_operand.hbm [shape: f32[288,256], index: 7, kind: output, shape index: {}]  }
   0x1   :  { %3764 = sst [smem:[#allocation89_spill]] %s3690_s3 }
   0x2   :  { %12 = vsyncpa [#allocation3], 0 }
   0x3   :  { %14 = vsyncpa [#allocation3 + $0x1], 0 }
   0x4   :  { %15 = vsyncpa [#allocation6], 0 }
   0x5   :  { %16 = vsyncpa [#allocation4], 0 }
   0x6   :  { %18 = vsyncpa [#allocation4 + $0x1], 0  ;;  %s2429_s24 = smov 0   ;;  %s2431_s25 = smov 0  }
   0x7   :  { %s2433_s26 = smov 0   ;;  %s2435_s27 = smov 0  }
   0x8 LB: > { %s2450_s28 = sadd.s32 4294967295, %s2379_s27   ;;  %s1882_s29 = sadd.s32 4294967294, %s2379_s27   ;;  %s2379_s27 = sphi %s2435_s27, %s3937_s27   ;;  %s2375_s26 = sphi %s2433_s26, %s3936_s26   ;;  %s2371_s25 = sphi %s2431_s25, %s3935_s25   ;;  %s2367_s24 = sphi %s2429_s24, %s3934_s24  }
   0x9   : > { %p44_p0 = scmp.ne.s32.totalorder %s2371_s25, %s2367_s24  ;;  %p3695_p1 = scmp.eq.s32.totalorder %s2450_s28, 0 }
   0xa   : > { %p200_p3 = scmp.eq.s32.totalorder %s1882_s29, 2  ;;  %p1883_p5 = scmp.ge.s32.totalorder %s2379_s27, 1 }
   0xb   : > { %p2459_p4 = por %p3695_p1, %p44_p0  ;;  %p207_p7 = scmp.lt.s32.totalorder %s2379_s27, 4 }
   0xc   : > { %p2464_p6 = por %p200_p3, %p44_p0  ;;  %s2381_s10 = smov [#allocation5]  }
   0xd   : > { %s3765_s30 = scalar_select %p2459_p4, 1, 0 }
   0xe   : > { %s3766_s8 = scalar_select %p2464_p6, 1, 0 }
   0xf   : > { %p2469_p8 = pnand %p1883_p5, %p207_p7  ;;  %s225_s11 = sshll.u32 %s2381_s10, 4  ;;  %s226_s11 = int_to_ptr.vmem [resolvable:$true] %s225_s11 }
  0x10   : > { %s2382_s13 = smov [#allocation7]   ;;  %s3769_s3 = sld [smem:[#allocation89_spill]] }
  0x11   : > { %s3767_s9 = scalar_select %p2469_p8, 1, 0 }
  0x12   : > { %p2044_p9 = pneg %p2469_p8  ;;  %s241_s14 = sshll.u32 %s2382_s13, 4  ;;  %s2481_s14 = int_to_ptr.vmem [resolvable:$true] %s241_s14 }
  0x14   : > { %p2477_p10 = pnand %p2044_p9, %p3695_p1 }
  0x16   : > { %s2223_s17 = scalar_lea.hbm %s3769_s3, 8192  ;;  %p2225_p12 = pneg %p2477_p10 }
  0x17   : > { %p2224_p11 = scmp.ne.s32.totalorder %s3769_s3, %s2223_s17  ;;  %p2230_p3 = scmp.lt.u32.totalorder %s2223_s17, %s3769_s3 }
  0x19   : > { %p2226_p13 = pnand %p2225_p12, %p2224_p11 }
  0x1b   : > { %p2227_p0 = pneg %p2226_p13 }
  0x1d   : > { %p2232_p5 = pnand %p2230_p3, %p2227_p0 }
  0x1f   : > { %2235 = shalt.err (!%p2232_p5)
}
  0x20   : > { %s2236_s22 = scalar_lea.vmem %s226_s11, 8192  ;;  %p2244_p2 = scmp.lt.s32.totalorder %s226_s11, %s226_s11 }
  0x21   : > { %p2237_p7 = scmp.ne.s32.totalorder %s226_s11, %s2236_s22  ;;  %p2245_p6 = scmp.lt.s32.totalorder %s2236_s22, %s2236_s22 }
  0x23   : > { %p2239_p9 = pnand %p2237_p7, %p2225_p12  ;;  %p2246_p4 = por %p2245_p6, %p2244_p2 }
  0x25   : > { %p2240_p1 = pneg %p2239_p9 }
  0x27   : > { %p2247_p8 = pnand %p2246_p4, %p2240_p1 }
  0x29   : > { %2250 = shalt.err (!%p2247_p8)
}
  0x2a   : > { %s3698_s23 = smov 256   ;;  %s3699_s29 = smov 16  }
  0x2b   : > { %2047 = dma.hbm_to_vmem [thread:$0]  (!%p2477_p10), %s3769_s3, 8192, %s226_s11, [#allocation6], %s3698_s23, %s3698_s23, %s3699_s29  }
  0x2c   : > { %s2251_s17 = scalar_lea.hbm %s3692_s5, 8192 }
  0x2d   : > { %p2252_p1 = scmp.ne.s32.totalorder %s3692_s5, %s2251_s17  ;;  %p2258_p6 = scmp.lt.u32.totalorder %s2251_s17, %s3692_s5 }
  0x2f   : > { %p2254_p2 = pnand %p2252_p1, %p2225_p12 }
  0x31   : > { %p2255_p4 = pneg %p2254_p2 }
  0x33   : > { %p2260_p8 = pnand %p2258_p6, %p2255_p4 }
  0x35   : > { %2263 = shalt.err (!%p2260_p8)
}
  0x36   : > { %s2264_s11 = scalar_lea.vmem %s2481_s14, 8192  ;;  %p2272_p3 = scmp.lt.s32.totalorder %s2481_s14, %s2481_s14 }
  0x37   : > { %p2265_p11 = scmp.ne.s32.totalorder %s2481_s14, %s2264_s11  ;;  %p2273_p5 = scmp.lt.s32.totalorder %s2264_s11, %s2264_s11 }
  0x39   : > { %p2267_p13 = pnand %p2265_p11, %p2225_p12  ;;  %p2274_p7 = por %p2273_p5, %p2272_p3 }
  0x3b   : > { %p2268_p0 = pneg %p2267_p13 }
  0x3d   : > { %p2275_p9 = pnand %p2274_p7, %p2268_p0 }
  0x3f   : > { %2278 = shalt.err (!%p2275_p9)
}
  0x40   : > { %2050 = dma.hbm_to_vmem [thread:$0]  (!%p2477_p10), %s3692_s5, 8192, %s2481_s14, [#allocation6], %s3698_s23, %s3698_s23, %s3699_s29  }
  0x41   : > { %s2537_s12 = sadd.s32 1, %s2379_s27   ;;  %s31_s13 = sadd.s32 1, %s2375_s26 }
  0x42   : > { %s28_s15 = ssub.s32 %s2379_s27, %s2537_s12  ;;  %p38_p12 = scmp.ne.s32.totalorder %s2375_s26, %s2371_s25 }
  0x43   : > { %p29_p1 = scmp.eq.s32.totalorder %s28_s15, 0  ;;  %p39_p2 = scmp.eq.s32.totalorder %s2379_s27, 0 }
  0x44   : > { %p3770_p4 = scmp.eq.s32.totalorder %s2450_s28, 2  ;;  %p2061_p8 = scmp.lt.s32.totalorder %s2379_s27, 3 }
  0x45   : > { %s2553_s17 = scalar_select %p29_p1, %s2375_s26, %s31_s13  }
  0x46   : > { %p2547_p6 = por %p3770_p4, %p38_p12  ;;  %p40_p11 = por %p39_p2, %p38_p12 }
  0x47   : > { %s258_s18 = sand.u32 1, %s2375_s26   ;;  %s1900_s14 = smul.u32 3072, %s2379_s27 }
  0x48   : > { %s2030_s19 = smul.u32 192, %s258_s18  ;;  %p2557_p10 = pnand %p2061_p8, %p40_p11 }
  0x49   : > { %s2564_s22 = scalar_lea.hbm %s3687_s0, %s1900_s14  ;;  %s2568_s15 = scalar_lea.sflag [#allocation3], %s258_s18 }
  0x4a   : > { %s262_s10 = scalar_lea.vmem [#allocation2], %s2030_s19  ;;  %s2279_s23 = scalar_lea.hbm %s2564_s22, 3072 }
  0x4b   : > { %s270_s13 = sshll.u32 %s262_s10, 4  ;;  %p2280_p13 = scmp.ne.s32.totalorder %s2564_s22, %s2279_s23  ;;  %s2566_s13 = int_to_ptr.vmem [resolvable:$true] %s270_s13 }
  0x4c   : > { %p2281_p0 = pneg %p2557_p10  ;;  %s2284_s11 = scalar_lea.hbm %s3687_s0, 9216 }
  0x4d   : > { %p2285_p7 = scmp.lt.u32.totalorder %s2564_s22, %s3687_s0  ;;  %p2286_p9 = scmp.lt.u32.totalorder %s2284_s11, %s2279_s23 }
  0x4e   : > { %p2282_p3 = pnand %p2281_p0, %p2280_p13  ;;  %p2288_p1 = scmp.lt.u32.totalorder %s2279_s23, %s2564_s22 }
  0x4f   : > { %p2287_p12 = por %p2286_p9, %p2285_p7 }
  0x50   : > { %p2283_p5 = pneg %p2282_p3 }
  0x51   : > { %p2289_p2 = por %p2288_p1, %p2287_p12 }
  0x53   : > { %p2290_p4 = pnand %p2289_p2, %p2283_p5 }
  0x55   : > { %2293 = shalt.err (!%p2290_p4)
}
  0x56   : > { %s2294_s18 = scalar_lea.vmem %s2566_s13, 3072  ;;  %s2385_s19 = smov [#allocation2]  }
  0x57   : > { %p2295_p8 = scmp.ne.s32.totalorder %s2566_s13, %s2294_s18  ;;  %s2299_s10 = sshll.u32 %s2385_s19, 4  ;;  %s2300_s10 = int_to_ptr.vmem [resolvable:$false] %s2299_s10 }
  0x58   : > { %s2301_s3 = scalar_lea.vmem %s2300_s10, 6144  ;;  %p2302_p3 = scmp.lt.s32.totalorder %s2566_s13, %s2300_s10 }
  0x59   : > { %p2297_p11 = pnand %p2295_p8, %p2281_p0  ;;  %p2303_p7 = scmp.lt.s32.totalorder %s2301_s3, %s2294_s18 }
  0x5b   : > { %p2298_p13 = pneg %p2297_p11  ;;  %p2304_p9 = por %p2303_p7, %p2302_p3 }
  0x5d   : > { %p2305_p12 = pnand %p2304_p9, %p2298_p13 }
  0x5f   : > { %2308 = shalt.err (!%p2305_p12)
}
  0x60   : > { %s3773_s23 = smov 16   ;;  %s3774_s29 = smov 256  }
  0x61   : > { %2054 = dma.hbm_to_vmem [thread:$0]  (!%p2557_p10), %s2564_s22, 3072, %s2566_s13, %s2568_s15, %s3774_s29, %s3774_s29, %s3773_s23  }
  0x62   : > { %p3775_p0 = scmp.ne.s32.totalorder %s3767_s9, 0 }
  0x64   : > { %282 = sbr.rel (%p3775_p0) target bundleno = 910 (0x38e), region = 48 }
  0x6b   : > { %s2602_s14 = sand.u32 1, %s2371_s25   ;;  %p3776_p5 = scmp.ne.s32.totalorder %s3765_s30, 0 }
  0x6c   : > { %s2031_s21 = smul.u32 192, %s2602_s14  ;;  %s285_s11 = scalar_lea.sflag [#allocation3], %s2602_s14 }
  0x6e   : > { %s2608_s20 = scalar_lea.vmem [#allocation2], %s2031_s21 }
  0x6f   : > { %2354 = dma.done.wait (%p3776_p5), %s285_s11, 3072  }
  0x70   : > { %2356 = vsyncadd (%p3776_p5), %s285_s11, 4294964224  ;;  %p3777_p10 = scmp.eq.s32.totalorder %s2450_s28, 0 }
  0x72   : > { %2358 = dma.done.wait (%p3777_p10), [#allocation6], 16384   ;;  %p3778_p1 = pmov %p3777_p10 }
  0x73   : > { %v2619_v0 = vld [vmem:[%s2608_s20 + $0x10] sm:$0xff]  ;;  %v2622_v1 = vld [vmem:[%s2608_s20 + $0x18] sm:$0xff]  ;;  %v2625_v2 = vld [vmem:[%s2608_s20] sm:$0xff]  ;;  %s3567_s3 = scalar_lea.vmem [#allocation8], %s2031_s21  ;;  %s1901_s23 = smul.u32 3072, %s2450_s28 }
  0x74   : > { %2360 = vsyncadd (%p3778_p1), [#allocation6], 4294950912  ;;  %v360_v3 = vadd.f32 %v2622_v1, %v2619_v0  ;;  %v2630_v4 = vld [vmem:[%s2608_s20 + $0x8] sm:$0xff]  ;;  %v395_v5 = vmul.f32 %v2619_v0, %v2619_v0  ;;  %v396_v6 = vmul.f32 %v2622_v1, %v2622_v1  ;;  %v393_v7 = vmul.f32 %v2625_v2, %v2625_v2  ;;  %v2639_v8 = vld [vmem:[%s2608_s20 + $0x20] sm:$0xff]  ;;  %s1790_s29 = sshll.u32 %s3567_s3, 4  ;;  %s1776_s28 = scalar_lea.sflag [#allocation4], %s2602_s14  ;;  %s3642_s29 = int_to_ptr.vmem [resolvable:$true] %s1790_s29 }
  0x75   : > { %v2642_v9 = vld [vmem:[%s2608_s20 + $0x28] sm:$0xff]  ;;  %v357_v10 = vadd.f32 %v2630_v4, %v2625_v2  ;;  %v394_v11 = vmul.f32 %v2630_v4, %v2630_v4  ;;  %v397_v13 = vmul.f32 %v2639_v8, %v2639_v8  ;;  %v2653_v16 = vld [vmem:[%s2608_s20 + $0x30] sm:$0xff]  ;;  %v2656_v17 = vld [vmem:[%s2608_s20 + $0x38] sm:$0xff]  ;;  %s2309_s30 = scalar_lea.vmem %s3642_s29, 3072  ;;  %s2386_s9 = smov [#allocation8]  }
  0x76   : > { %361 = vadd.xlane.f32.xlu1 %v360_v3  ;;  %v420_v12 = vadd.f32 %v396_v6, %v395_v5  ;;  %v398_v14 = vmul.f32 %v2642_v9, %v2642_v9  ;;  %v399_v19 = vmul.f32 %v2653_v16, %v2653_v16  ;;  %v400_v20 = vmul.f32 %v2656_v17, %v2656_v17  ;;  %v2665_v22 = vld [vmem:[%s2608_s20 + $0x40] sm:$0xff]  ;;  %v2668_v23 = vld [vmem:[%s2608_s20 + $0x48] sm:$0xff]  ;;  %v658_v25 = vld [vmem:[#allocation5 + $0x18] sm:$0xff]  ;;  %p2310_p2 = scmp.ne.s32.totalorder %s3642_s29, %s2309_s30  ;;  %s2313_s22 = sshll.u32 %s2386_s9, 4  ;;  %s2314_s22 = int_to_ptr.vmem [resolvable:$false] %s2313_s22 }
  0x77   : > { %358 = vadd.xlane.f32.xlu0 %v357_v10  ;;  %v417_v15 = vadd.f32 %v394_v11, %v393_v7  ;;  %v363_v21 = vadd.f32 %v2642_v9, %v2639_v8  ;;  %v656_v24 = vld [vmem:[#allocation5 + $0x8] sm:$0xff]  ;;  %v655_v26 = vld [vmem:[#allocation5] sm:$0xff]  ;;  %v657_v27 = vld [vmem:[#allocation5 + $0x10] sm:$0xff]  ;;  %v401_v31 = vmul.f32 %v2665_v22, %v2665_v22  ;;  %v402_v32 = vmul.f32 %v2668_v23, %v2668_v23  ;;  %s2315_s13 = scalar_lea.vmem %s2314_s22, 6144  ;;  %p2316_p11 = scmp.lt.s32.totalorder %s3642_s29, %s2314_s22 }
  0x78   : > { %v423_v18 = vadd.f32 %v398_v14, %v397_v13  ;;  %v660_v28 = vld [vmem:[#allocation5 + $0x28] sm:$0xff]  ;;  %v662_v29 = vld [vmem:[#allocation5 + $0x38] sm:$0xff]  ;;  %v426_v30 = vadd.f32 %v400_v20, %v399_v19  ;;  %v2675_v33 = vld [vmem:[%s2608_s20 + $0x50] sm:$0xff]  ;;  %v366_v34 = vadd.f32 %v2656_v17, %v2653_v16  ;;  %v1902_v36 = vpack.c.bf16 %v658_v25, %v656_v24  ;;  %p2311_p4 = pnand %p2310_p2, %p2547_p6  ;;  %p2317_p13 = scmp.lt.s32.totalorder %s2315_s13, %s2309_s30 }
  0x79   : > { %v2680_v35 = vld [vmem:[%s2608_s20 + $0x58] sm:$0xff]  ;;  %v1904_v37 = vpack.c.bf16 %v657_v27, %v655_v26  ;;  %v659_v38 = vld [vmem:[#allocation5 + $0x20] sm:$0xff]  ;;  %v661_v39 = vld [vmem:[#allocation5 + $0x30] sm:$0xff]  ;;  %v1906_v40 = vpack.c.bf16 %v662_v29, %v660_v28  ;;  %v403_v43 = vmul.f32 %v2675_v33, %v2675_v33  ;;  %v429_v44 = vadd.f32 %v402_v32, %v401_v31 }
  0x7a   : > { %421 = vadd.xlane.f32.xlu1 %v420_v12  ;;  %v664_v41 = vld [vmem:[#allocation5 + $0x48] sm:$0xff]  ;;  %v666_v42 = vld [vmem:[#allocation5 + $0x58] sm:$0xff]  ;;  %1903 = vmatprep.subr.bf16.mxu0 %v1902_v36  ;;  %v404_v45 = vmul.f32 %v2680_v35, %v2680_v35  ;;  %v2687_v46 = vld [vmem:[%s2608_s20 + $0x60] sm:$0xff]  ;;  %v1908_v47 = vpack.c.bf16 %v661_v39, %v659_v38  ;;  %v369_v48 = vadd.f32 %v2668_v23, %v2665_v22  ;;  %p2312_p8 = pneg %p2311_p4  ;;  %p2318_p3 = por %p2317_p13, %p2316_p11 }
  0x7b   : > { %418 = vadd.xlane.f32.xlu0 %v417_v15  ;;  %1905 = vmatpush1.bf16.msra.mxu0 %v1904_v37  ;;  %v2692_v49 = vld [vmem:[%s2608_s20 + $0x68] sm:$0xff]  ;;  %v1910_v50 = vpack.c.bf16 %v666_v42, %v664_v41  ;;  %v663_v51 = vld [vmem:[#allocation5 + $0x40] sm:$0xff]  ;;  %v665_v52 = vld [vmem:[#allocation5 + $0x50] sm:$0xff]  ;;  %v405_v55 = vmul.f32 %v2687_v46, %v2687_v46  ;;  %v372_v60 = vadd.f32 %v2680_v35, %v2675_v33 }
  0x7c   : > { %1907 = vmatprep.subr.bf16.mxu0 %v1906_v40  ;;  %v668_v53 = vld [vmem:[#allocation5 + $0x68] sm:$0xff]  ;;  %v670_v54 = vld [vmem:[#allocation5 + $0x78] sm:$0xff]  ;;  %v432_v56 = vadd.f32 %v404_v45, %v403_v43  ;;  %v406_v57 = vmul.f32 %v2692_v49, %v2692_v49  ;;  %v2699_v58 = vld [vmem:[%s2608_s20 + $0x70] sm:$0xff]  ;;  %v1912_v59 = vpack.c.bf16 %v665_v52, %v663_v51  ;;  %v375_v14 = vadd.f32 %v2692_v49, %v2687_v46  ;;  %p2319_p7 = pnand %p2318_p3, %p2312_p8 }
  0x7d   : > { %v2704_v61 = vld [vmem:[%s2608_s20 + $0x78] sm:$0xff]  ;;  %v1914_v62 = vpack.c.bf16 %v670_v54, %v668_v53  ;;  %v667_v63 = vld [vmem:[#allocation5 + $0x60] sm:$0xff]  ;;  %v669_v3 = vld [vmem:[#allocation5 + $0x70] sm:$0xff]  ;;  %v407_v7 = vmul.f32 %v2699_v58, %v2699_v58 }
  0x7e   : > { %424 = vadd.xlane.f32.xlu1 %v423_v18  ;;  %v672_v5 = vld [vmem:[#allocation5 + $0x88] sm:$0xff]  ;;  %v674_v6 = vld [vmem:[#allocation5 + $0x98] sm:$0xff]  ;;  %v435_v10 = vadd.f32 %v406_v57, %v405_v55  ;;  %v408_v11 = vmul.f32 %v2704_v61, %v2704_v61  ;;  %v2711_v12 = vld [vmem:[%s2608_s20 + $0x80] sm:$0xff]  ;;  %v1916_v13 = vpack.c.bf16 %v669_v3, %v667_v63 }
  0x7f   : > { %364 = vadd.xlane.f32.xlu0 %v363_v21  ;;  %1909 = vmatpush1.bf16.msra.mxu0 %v1908_v47  ;;  %v2716_v15 = vld [vmem:[%s2608_s20 + $0x88] sm:$0xff]  ;;  %v1918_v18 = vpack.c.bf16 %v674_v6, %v672_v5  ;;  %v671_v19 = vld [vmem:[#allocation5 + $0x80] sm:$0xff]  ;;  %v673_v20 = vld [vmem:[#allocation5 + $0x90] sm:$0xff]  ;;  %v409_v25 = vmul.f32 %v2711_v12, %v2711_v12 }
  0x80   : > { %1911 = vmatprep.subr.bf16.mxu0 %v1910_v50  ;;  %v676_v21 = vld [vmem:[#allocation5 + $0xa8] sm:$0xff]  ;;  %v678_v24 = vld [vmem:[#allocation5 + $0xb8] sm:$0xff]  ;;  %v438_v26 = vadd.f32 %v408_v11, %v407_v7  ;;  %v410_v27 = vmul.f32 %v2716_v15, %v2716_v15  ;;  %v2723_v28 = vld [vmem:[%s2608_s20 + $0x90] sm:$0xff]  ;;  %v1920_v29 = vpack.c.bf16 %v673_v20, %v671_v19 }
  0x81   : > { %v2728_v31 = vld [vmem:[%s2608_s20 + $0x98] sm:$0xff]  ;;  %v1922_v32 = vpack.c.bf16 %v678_v24, %v676_v21  ;;  %v677_v36 = vld [vmem:[#allocation5 + $0xb0] sm:$0xff]  ;;  %v680_v37 = vld [vmem:[#allocation5 + $0xc8] sm:$0xff]  ;;  %v411_v39 = vmul.f32 %v2723_v28, %v2723_v28 }
  0x82   : > { %427 = vadd.xlane.f32.xlu1 %v426_v30  ;;  %v378_v30 = vadd.f32 %v2704_v61, %v2699_v58  ;;  %v682_v38 = vld [vmem:[#allocation5 + $0xd8] sm:$0xff]  ;;  %v441_v40 = vadd.f32 %v410_v27, %v409_v25  ;;  %v412_v41 = vmul.f32 %v2728_v31, %v2728_v31  ;;  %v2735_v42 = vld [vmem:[%s2608_s20 + $0xa0] sm:$0xff]  ;;  %v2740_v45 = vld [vmem:[%s2608_s20 + $0xa8] sm:$0xff] }
  0x83   : > { %367 = vadd.xlane.f32.xlu0 %v366_v34  ;;  %1913 = vmatpush1.bf16.msra.mxu0 %v1912_v59  ;;  %v675_v34 = vld [vmem:[#allocation5 + $0xa0] sm:$0xff]  ;;  %v1926_v47 = vpack.c.bf16 %v682_v38, %v680_v37  ;;  %v681_v50 = vld [vmem:[#allocation5 + $0xd0] sm:$0xff]  ;;  %v684_v51 = vld [vmem:[#allocation5 + $0xe8] sm:$0xff]  ;;  %v413_v53 = vmul.f32 %v2735_v42, %v2735_v42  ;;  %v414_v55 = vmul.f32 %v2740_v45, %v2740_v45 }
  0x84   : > { %1915 = vmatprep.subr.bf16.mxu0 %v1914_v62  ;;  %v1924_v43 = vpack.c.bf16 %v677_v36, %v675_v34  ;;  %v686_v52 = vld [vmem:[#allocation5 + $0xf8] sm:$0xff]  ;;  %v444_v54 = vadd.f32 %v412_v41, %v411_v39  ;;  %v384_v59 = vadd.f32 %v2728_v31, %v2723_v28  ;;  %v683_v63 = vld [vmem:[#allocation5 + $0xe0] sm:$0xff]  ;;  %v685_v3 = vld [vmem:[#allocation5 + $0xf0] sm:$0xff] }
  0x85   : > { %v1930_v62 = vpack.c.bf16 %v686_v52, %v684_v51  ;;  %v688_v5 = vld [vmem:[#allocation5 + $0x108] sm:$0xff]  ;;  %v690_v6 = vld [vmem:[#allocation5 + $0x118] sm:$0xff]  ;;  %v687_v19 = vld [vmem:[#allocation5 + $0x100] sm:$0xff] }
  0x86   : > { %430 = vadd.xlane.f32.xlu1 %v429_v44  ;;  %v381_v44 = vadd.f32 %v2716_v15, %v2711_v12  ;;  %v689_v20 = vld [vmem:[#allocation5 + $0x110] sm:$0xff]  ;;  %v692_v21 = vld [vmem:[#allocation5 + $0x128] sm:$0xff]  ;;  %v694_v24 = vld [vmem:[#allocation5 + $0x138] sm:$0xff] }
  0x87   : > { %370 = vadd.xlane.f32.xlu0 %v369_v48  ;;  %1917 = vmatpush1.bf16.msra.mxu0 %v1916_v13  ;;  %v679_v48 = vld [vmem:[#allocation5 + $0xc0] sm:$0xff]  ;;  %v1932_v13 = vpack.c.bf16 %v685_v3, %v683_v63  ;;  %v696_v34 = vld [vmem:[#allocation5 + $0x148] sm:$0xff]  ;;  %v698_v36 = vld [vmem:[#allocation5 + $0x158] sm:$0xff] }
  0x88   : > { %1919 = vmatprep.subr.bf16.mxu0 %v1918_v18  ;;  %v1928_v57 = vpack.c.bf16 %v681_v50, %v679_v48  ;;  %v1934_v18 = vpack.c.bf16 %v690_v6, %v688_v5  ;;  %v1942_v38 = vpack.c.bf16 %v698_v36, %v696_v34  ;;  %v695_v39 = vld [vmem:[#allocation5 + $0x140] sm:$0xff]  ;;  %v700_v41 = vld [vmem:[#allocation5 + $0x168] sm:$0xff]  ;;  %v701_v50 = vld [vmem:[#allocation5 + $0x170] sm:$0xff] }
  0x89   : > { %v699_v48 = vld [vmem:[#allocation5 + $0x160] sm:$0xff]  ;;  %v704_v51 = vld [vmem:[#allocation5 + $0x188] sm:$0xff]  ;;  %v706_v52 = vld [vmem:[#allocation5 + $0x198] sm:$0xff] }
  0x8a   : > { %433 = vadd.xlane.f32.xlu1 %v432_v56  ;;  %v2747_v56 = vld [vmem:[%s2608_s20 + $0xb0] sm:$0xff]  ;;  %v707_v5 = vld [vmem:[#allocation5 + $0x1a0] sm:$0xff] }
  0x8b   : > { %373 = vadd.xlane.f32.xlu0 %v372_v60  ;;  %1921 = vmatpush1.bf16.msra.mxu0 %v1920_v29  ;;  %v2752_v60 = vld [vmem:[%s2608_s20 + $0xb8] sm:$0xff]  ;;  %v415_v7 = vmul.f32 %v2747_v56, %v2747_v56  ;;  %v1938_v29 = vpack.c.bf16 %v694_v24, %v692_v21  ;;  %v709_v6 = vld [vmem:[#allocation5 + $0x1b0] sm:$0xff]  ;;  %s3639_s20 = scalar_lea.hbm %s3694_s7, %s1901_s23 }
  0x8c   : > { %1923 = vmatprep.subr.bf16.mxu0 %v1922_v32  ;;  %v416_v11 = vmul.f32 %v2752_v60, %v2752_v60  ;;  %v390_v27 = vadd.f32 %v2752_v60, %v2747_v56  ;;  %v693_v32 = vld [vmem:[#allocation5 + $0x130] sm:$0xff] }
  0x8d   : > { %v721_v36 = vld [vmem:[#allocation7 + $0x10] sm:$0xff] }
  0x8e   : > { %436 = vadd.xlane.f32.xlu1 %v435_v10  ;;  %v447_v10 = vadd.f32 %v414_v55, %v413_v53  ;;  %v450_v25 = vadd.f32 %v416_v11, %v415_v7  ;;  %v1948_v53 = vpack.c.bf16 %v701_v50, %v699_v48  ;;  %v703_v55 = vld [vmem:[#allocation5 + $0x180] sm:$0xff]  ;;  %v712_v7 = vld [vmem:[#allocation5 + $0x1c8] sm:$0xff]  ;;  %v1956_v11 = vpack.c.bf16 %v709_v6, %v707_v5 }
  0x8f   : > { %376 = vadd.xlane.f32.xlu0 %v375_v14  ;;  %1925 = vmatpush1.bf16.msra.mxu0 %v1924_v43  ;;  %v387_v14 = vadd.f32 %v2740_v45, %v2735_v42  ;;  %v702_v43 = vld [vmem:[#allocation5 + $0x178] sm:$0xff] }
  0x90   : > { %1927 = vmatprep.subr.bf16.mxu0 %v1926_v47  ;;  %v1946_v47 = vpack.c.bf16 %v702_v43, %v700_v41  ;;  %v723_v41 = vld [vmem:[#allocation7 + $0x20] sm:$0xff]  ;;  %v725_v43 = vld [vmem:[#allocation7 + $0x30] sm:$0xff] }
  0x91   : > { %v1972_v48 = vpack.c.bf16 %v725_v43, %v723_v41 }
  0x92   : > { %439 = vadd.xlane.f32.xlu1 %v438_v26  ;;  %v1936_v26 = vpack.c.bf16 %v689_v20, %v687_v19  ;;  %v716_v19 = vld [vmem:[#allocation5 + $0x1e8] sm:$0xff]  ;;  %v718_v20 = vld [vmem:[#allocation5 + $0x1f8] sm:$0xff] }
  0x93   : > { %379 = vadd.xlane.f32.xlu0 %v378_v30  ;;  %1929 = vmatpush1.bf16.msra.mxu0 %v1928_v57  ;;  %v691_v30 = vld [vmem:[#allocation5 + $0x120] sm:$0xff]  ;;  %v705_v57 = vld [vmem:[#allocation5 + $0x190] sm:$0xff]  ;;  %v1962_v24 = vpack.c.bf16 %v718_v20, %v716_v19  ;;  %v586_v19 = vlaneseq }
  0x94   : > { %1931 = vmatprep.subr.bf16.mxu0 %v1930_v62  ;;  %v1940_v37 = vpack.c.bf16 %v693_v32, %v691_v30  ;;  %v710_v62 = vld [vmem:[#allocation5 + $0x1b8] sm:$0xff]  ;;  %v1952_v63 = vpack.c.bf16 %v705_v57, %v703_v55  ;;  %v719_v32 = vld [vmem:[#allocation7] sm:$0xff] }
  0x95   : > { %v722_v30 = vld [vmem:[#allocation7 + $0x18] sm:$0xff] }
  0x96   : > { %442 = vadd.xlane.f32.xlu1 %v441_v40  ;;  %v697_v40 = vld [vmem:[#allocation5 + $0x150] sm:$0xff] }
  0x97   : > { %382 = vadd.xlane.f32.xlu0 %v381_v44  ;;  %1933 = vmatpush1.bf16.msra.mxu0 %v1932_v13  ;;  %v1944_v44 = vpack.c.bf16 %v697_v40, %v695_v39  ;;  %v1968_v39 = vpack.c.bf16 %v721_v36, %v719_v32  ;;  %v587_v32 = vshrl.u32 %v586_v19, 7 }
  0x98   : > { %1935 = vmatprep.subr.bf16.mxu0 %v1934_v18  ;;  %v713_v18 = vld [vmem:[#allocation5 + $0x1d0] sm:$0xff] }
  0x99   : > { %v2778_v43 = vsub.s32 0, %v587_v32 }
  0x9a   : > { %445 = vadd.xlane.f32.xlu1 %v444_v54  ;;  %v1950_v54 = vpack.c.bf16 %v706_v52, %v704_v51  ;;  %v727_v51 = vld [vmem:[#allocation7 + $0x40] sm:$0xff]  ;;  %v729_v52 = vld [vmem:[#allocation7 + $0x50] sm:$0xff] }
  0x9b   : > { %385 = vadd.xlane.f32.xlu0 %v384_v59  ;;  %1937 = vmatpush1.bf16.msra.mxu0 %v1936_v26  ;;  %v708_v59 = vld [vmem:[#allocation5 + $0x1a8] sm:$0xff]  ;;  %v717_v26 = vld [vmem:[#allocation5 + $0x1f0] sm:$0xff]  ;;  %3779 = vst [vmem:[#allocation12_spill] sm:$0xff] %v2778_v43 }
  0x9c   : > { %1939 = vmatprep.subr.bf16.mxu0 %v1938_v29  ;;  %v1954_v3 = vpack.c.bf16 %v710_v62, %v708_v59  ;;  %v720_v29 = vld [vmem:[#allocation7 + $0x8] sm:$0xff] }
  0x9d   : > { %v1966_v34 = vpack.c.bf16 %v722_v30, %v720_v29 }
  0x9e   : > { %448 = vadd.xlane.f32.xlu1 %v447_v10  ;;  %v714_v10 = vld [vmem:[#allocation5 + $0x1d8] sm:$0xff] }
  0x9f   : > { %388 = vadd.xlane.f32.xlu0 %v387_v14  ;;  %1941 = vmatpush1.bf16.msra.mxu0 %v1940_v37  ;;  %v1958_v13 = vpack.c.bf16 %v714_v10, %v712_v7  ;;  %v711_v14 = vld [vmem:[#allocation5 + $0x1c0] sm:$0xff]  ;;  %v724_v37 = vld [vmem:[#allocation7 + $0x28] sm:$0xff] }
  0xa0   : > { %1943 = vmatprep.subr.bf16.mxu0 %v1942_v38  ;;  %v1960_v21 = vpack.c.bf16 %v713_v18, %v711_v14  ;;  %v726_v38 = vld [vmem:[#allocation7 + $0x38] sm:$0xff]  ;;  %1967 = vmatprep.subr.bf16.mxu1 %v1966_v34 }
  0xa1   : > { %v1970_v40 = vpack.c.bf16 %v726_v38, %v724_v37  ;;  %1969 = vmatpush1.bf16.msra.mxu1 %v1968_v39 }
  0xa2   : > { %451 = vadd.xlane.f32.xlu1 %v450_v25  ;;  %v715_v25 = vld [vmem:[#allocation5 + $0x1e0] sm:$0xff] }
  0xa3   : > { %391 = vadd.xlane.f32.xlu0 %v390_v27  ;;  %1945 = vmatpush1.bf16.msra.mxu0 %v1944_v44  ;;  %v1964_v27 = vpack.c.bf16 %v717_v26, %v715_v25  ;;  %v728_v44 = vld [vmem:[#allocation7 + $0x48] sm:$0xff] }
  0xa4   : > { %1947 = vmatprep.subr.bf16.mxu0 %v1946_v47  ;;  %v730_v47 = vld [vmem:[#allocation7 + $0x58] sm:$0xff]  ;;  %1971 = vmatprep.subr.bf16.mxu1 %v1970_v40 }
  0xa5   : > { %v1974_v50 = vpack.c.bf16 %v730_v47, %v728_v44  ;;  %1973 = vmatpush1.bf16.msra.mxu1 %v1972_v48 }
  0xa7   : > { %1949 = vmatpush1.bf16.msra.mxu0 %v1948_v53  ;;  %v1976_v53 = vpack.c.bf16 %v729_v52, %v727_v51  ;;  %1975 = vmatprep.subr.bf16.mxu1 %v1974_v50  ;;  %v329_v50 = vld [vmem:[%s3688_s1] sm:$0x3]  ;;  %v2785_v51 = vsub.s32 1, %v587_v32 }
  0xa8   : > { %1951 = vmatprep.subr.bf16.mxu0 %v1950_v54 }
  0xa9   : > { %1977 = vmatpush1.bf16.msra.mxu1 %v1976_v53  ;;  %3780 = vst [vmem:[#allocation13_spill] sm:$0xff] %v2785_v51 }
  0xab   : > { %1953 = vmatpush1.bf16.msra.mxu0 %v1952_v63 }
  0xac   : > { %1955 = vmatprep.subr.bf16.mxu0 %v1954_v3 }
  0xaf   : > { %1957 = vmatpush1.bf16.msra.mxu0 %v1956_v11 }
  0xb0   : > { %1959 = vmatprep.subr.bf16.mxu0 %v1958_v13 }
  0xb3   : > { %1961 = vmatpush1.bf16.msra.mxu0 %v1960_v21 }
  0xb4   : > { %1963 = vmatprep.subr.bf16.mxu0 %v1962_v24 }
  0xb7   : > { %1965 = vmatpush1.bf16.msra.mxu0 %v1964_v27 }
 0x103   : > { %v362_v54 = vpop.xlane.xlu1 %361 }
 0x104   : > { %v2762_v55 = vmul.f32 0.00390625, %v362_v54  ;;  %v359_v57 = vpop.xlane.xlu0 %358 }
 0x105   : > { %v2764_v59 = vmul.f32 0.00390625, %v359_v57  ;;  %v330_v57 = vld [vmem:[%s3689_s2] sm:$0x3] }
 0x106   : > { %v478_v62 = vmul.f32 %v2762_v55, %v2762_v55  ;;  %v2805_v19 = vrot.slane %v330_v57, %v2778_v43 }
 0x107   : > { %v422_v63 = vpop.xlane.xlu1 %421  ;;  %v477_v6 = vmul.f32 %v2764_v59, %v2764_v59 }
 0x108   : > { %v466_v3 = vmul.f32 0.00390625, %v422_v63  ;;  %v419_v5 = vpop.xlane.xlu0 %418 }
 0x109   : > { %v465_v7 = vmul.f32 0.00390625, %v419_v5 }
 0x10a   : > { %v490_v10 = vsub.f32 %v466_v3, %v478_v62  ;;  %v2793_v3 = vrot.slane %v329_v50, %v2778_v43 }
 0x10b   : > { %v489_v11 = vsub.f32 %v465_v7, %v477_v6  ;;  %v425_v13 = vpop.xlane.xlu1 %424 }
 0x10c   : > { %v502_v14 = vmax.f32 %v490_v10, 0.0  ;;  %v365_v18 = vpop.xlane.xlu0 %364  ;;  %v467_v24 = vmul.f32 0.00390625, %v425_v13  ;;  %v2798_v10 = vrot.slane %v329_v50, %v2785_v51  ;;  %v513_v13 = vsub.f32 %v2625_v2, %v2764_v59 }
 0x10d   : > { %v501_v20 = vmax.f32 %v489_v11, 0.0  ;;  %v2770_v21 = vmul.f32 0.00390625, %v365_v18  ;;  %v515_v2 = vsub.f32 %v2619_v0, %v2762_v55 }
 0x10e   : > { %v538_v25 = vadd.f32 1e-05, %v502_v14  ;;  %v514_v14 = vsub.f32 %v2630_v4, %v2764_v59 }
 0x10f   : > { %v537_v26 = vadd.f32 1e-05, %v501_v20  ;;  %v479_v27 = vmul.f32 %v2770_v21, %v2770_v21  ;;  %v428_v29 = vpop.xlane.xlu1 %427  ;;  %v518_v50 = vsub.f32 %v2642_v9, %v2770_v21 }
 0x110   : > { %2103 = vrsqrt.f32 %v538_v25  ;;  %v368_v30 = vpop.xlane.xlu0 %367  ;;  %v468_v37 = vmul.f32 0.00390625, %v428_v29 }
 0x111   : > { %2105 = vrsqrt.f32 %v537_v26  ;;  %v491_v34 = vsub.f32 %v467_v24, %v479_v27  ;;  %v2774_v36 = vmul.f32 0.00390625, %v368_v30  ;;  %v516_v24 = vsub.f32 %v2622_v1, %v2762_v55 }
 0x112   : > { %v2812_v27 = vrot.slane %v330_v57, %v2785_v51 }
 0x113   : > { %v503_v38 = vmax.f32 %v491_v34, 0.0  ;;  %v480_v39 = vmul.f32 %v2774_v36, %v2774_v36  ;;  %v431_v40 = vpop.xlane.xlu1 %430 }
 0x114   : > { %v371_v41 = vpop.xlane.xlu0 %370  ;;  %v469_v52 = vmul.f32 0.00390625, %v431_v40 }
 0x115   : > { %v539_v44 = vadd.f32 1e-05, %v503_v38  ;;  %v492_v47 = vsub.f32 %v468_v37, %v480_v39  ;;  %v2780_v48 = vmul.f32 0.00390625, %v371_v41 }
 0x117   : > { %2107 = vrsqrt.f32 %v539_v44  ;;  %v504_v53 = vmax.f32 %v492_v47, 0.0  ;;  %v434_v54 = vpop.xlane.xlu1 %433  ;;  %v481_v62 = vmul.f32 %v2780_v48, %v2780_v48  ;;  %v517_v44 = vsub.f32 %v2639_v8, %v2770_v21 }
 0x118   : > { %v374_v63 = vpop.xlane.xlu0 %373  ;;  %v470_v7 = vmul.f32 0.00390625, %v434_v54 }
 0x119   : > { %v540_v5 = vadd.f32 1e-05, %v504_v53  ;;  %v2795_v6 = vmul.f32 0.00390625, %v374_v63  ;;  %v493_v18 = vsub.f32 %v469_v52, %v481_v62 }
 0x11a   : > { %v2104_v11 = vpop.eup %2103 }
 0x11b   : > { %v2106_v20 = vpop.eup %2105  ;;  %2109 = vrsqrt.f32 %v540_v5  ;;  %v482_v25 = vmul.f32 %v2795_v6, %v2795_v6  ;;  %v437_v26 = vpop.xlane.xlu1 %436  ;;  %v505_v4 = vmax.f32 %v493_v18, 0.0  ;;  %v564_v1 = vmul.f32 %v2104_v11, %v516_v24 }
 0x11c   : > { %v377_v59 = vpop.xlane.xlu0 %376  ;;  %v562_v29 = vmul.f32 %v2106_v20, %v514_v14  ;;  %v561_v30 = vmul.f32 %v2106_v20, %v513_v13  ;;  %v471_v37 = vmul.f32 0.00390625, %v437_v26  ;;  %v563_v41 = vmul.f32 %v2104_v11, %v515_v2 }
 0x11d   : > { %v494_v32 = vsub.f32 %v470_v7, %v482_v25  ;;  %v2816_v34 = vmul.f32 0.00390625, %v377_v59  ;;  %v541_v38 = vadd.f32 1e-05, %v505_v4  ;;  %v599_v5 = vmul.f32 %v2798_v10, %v564_v1 }
 0x11e   : > { %v597_v39 = vmul.f32 %v2798_v10, %v562_v29  ;;  %v596_v40 = vmul.f32 %v2793_v3, %v561_v30  ;;  %v598_v9 = vmul.f32 %v2793_v3, %v563_v41  ;;  %v519_v13 = vsub.f32 %v2653_v16, %v2774_v36 }
 0x11f   : > { %v506_v47 = vmax.f32 %v494_v32, 0.0  ;;  %v483_v0 = vmul.f32 %v2816_v34, %v2816_v34  ;;  %v440_v55 = vpop.xlane.xlu1 %439  ;;  %2111 = vrsqrt.f32 %v541_v38  ;;  %v520_v14 = vsub.f32 %v2656_v17, %v2774_v36 }
 0x120   : > { %v380_v52 = vpop.xlane.xlu0 %379  ;;  %v2827_v53 = vadd.f32 %v2812_v27, %v597_v39  ;;  %v2830_v54 = vadd.f32 %v2805_v19, %v596_v40  ;;  %v472_v7 = vmul.f32 0.00390625, %v440_v55  ;;  %v2845_v26 = vadd.f32 %v2812_v27, %v599_v5 }
 0x121   : > { %v2108_v57 = vpop.eup %2107  ;;  %v542_v62 = vadd.f32 1e-05, %v506_v47  ;;  %v495_v63 = vsub.f32 %v471_v37, %v483_v0  ;;  %v2832_v8 = vmul.f32 0.00390625, %v380_v52  ;;  %v2848_v4 = vadd.f32 %v2805_v19, %v598_v9 }
 0x122   : > { %3781 = vst [vmem:[#allocation14_spill] sm:$0xff] %v2827_v53  ;;  %3782 = vst [vmem:[#allocation15_spill] sm:$0xff] %v2830_v54  ;;  %858 = vmatprep.mubr.f32.mxu0 %v2827_v53  ;;  %v566_v21 = vmul.f32 %v2108_v57, %v518_v50  ;;  %v565_v11 = vmul.f32 %v2108_v57, %v517_v44  ;;  %v522_v5 = vsub.f32 %v2668_v23, %v2780_v48 }
 0x123   : > { %2113 = vrsqrt.f32 %v542_v62  ;;  %v507_v18 = vmax.f32 %v495_v63, 0.0  ;;  %859 = vmatmul.mubr.f32.vlgmr.msra.gmra.mrb[0].mxu0 %v2830_v54  ;;  %v443_v20 = vpop.xlane.xlu1 %442  ;;  %v484_v24 = vmul.f32 %v2832_v8, %v2832_v8  ;;  %3783 = vst [vmem:[#allocation16_spill] sm:$0xff] %v2845_v26  ;;  %3784 = vst [vmem:[#allocation17_spill] sm:$0xff] %v2848_v4  ;;  %v521_v62 = vsub.f32 %v2665_v22, %v2780_v48 }
 0x124   : > { %v383_v25 = vpop.xlane.xlu0 %382  ;;  %v473_v2 = vmul.f32 0.00390625, %v443_v20  ;;  %v601_v17 = vmul.f32 %v2798_v10, %v566_v21  ;;  %v600_v36 = vmul.f32 %v2793_v3, %v565_v11  ;;  %864 = vmatprep.mubr.f32.mxu0 %v2845_v26 }
 0x125   : > { %v2110_v16 = vpop.eup %2109  ;;  %v543_v59 = vadd.f32 1e-05, %v507_v18  ;;  %v2850_v29 = vmul.f32 0.00390625, %v383_v25  ;;  %v496_v30 = vsub.f32 %v472_v7, %v484_v24  ;;  %v523_v7 = vsub.f32 %v2675_v33, %v2795_v6 }
 0x126   : > { %v568_v32 = vmul.f32 %v2110_v16, %v520_v14  ;;  %v567_v37 = vmul.f32 %v2110_v16, %v519_v13  ;;  %v2859_v41 = vadd.f32 %v2812_v27, %v601_v17  ;;  %v2862_v47 = vadd.f32 %v2805_v19, %v600_v36 }
 0x127   : > { %2115 = vrsqrt.f32 %v543_v59  ;;  %v485_v1 = vmul.f32 %v2850_v29, %v2850_v29  ;;  %865 = vmatmul.mubr.f32.gmra.mrb[2].mxu0 %v2848_v4  ;;  %v446_v38 = vpop.xlane.xlu1 %445  ;;  %v508_v39 = vmax.f32 %v496_v30, 0.0  ;;  %v524_v13 = vsub.f32 %v2680_v35, %v2795_v6 }
 0x128   : > { %v386_v40 = vpop.xlane.xlu0 %385  ;;  %3785 = vst [vmem:[#allocation18_spill] sm:$0xff] %v2859_v41  ;;  %v474_v44 = vmul.f32 0.00390625, %v446_v38  ;;  %3786 = vst [vmem:[#allocation19_spill] sm:$0xff] %v2862_v47  ;;  %v603_v50 = vmul.f32 %v2798_v10, %v568_v32  ;;  %v602_v52 = vmul.f32 %v2793_v3, %v567_v37  ;;  %870 = vmatprep.mubr.f32.mxu0 %v2859_v41 }
 0x129   : > { %v497_v0 = vsub.f32 %v473_v2, %v485_v1  ;;  %v2864_v55 = vmul.f32 0.00390625, %v386_v40  ;;  %v2112_v57 = vpop.eup %2111  ;;  %v544_v63 = vadd.f32 1e-05, %v508_v39  ;;  %v526_v17 = vsub.f32 %v2692_v49, %v2816_v34 }
 0x12a   : > { %v2881_v14 = vadd.f32 %v2812_v27, %v603_v50  ;;  %v2884_v23 = vadd.f32 %v2805_v19, %v602_v52  ;;  %v570_v24 = vmul.f32 %v2112_v57, %v522_v5  ;;  %v569_v2 = vmul.f32 %v2112_v57, %v521_v62 }
 0x12b   : > { %v509_v9 = vmax.f32 %v497_v0, 0.0  ;;  %v486_v21 = vmul.f32 %v2864_v55, %v2864_v55  ;;  %871 = vmatmul.mubr.f32.gmra.mrb[4].mxu0 %v2862_v47  ;;  %v449_v11 = vpop.xlane.xlu1 %448  ;;  %2117 = vrsqrt.f32 %v544_v63  ;;  %v525_v57 = vsub.f32 %v2687_v46, %v2816_v34 }
 0x12c   : > { %v389_v22 = vpop.xlane.xlu0 %388  ;;  %3787 = vst [vmem:[#allocation20_spill] sm:$0xff] %v2881_v14  ;;  %3788 = vst [vmem:[#allocation21_spill] sm:$0xff] %v2884_v23  ;;  %876 = vmatprep.mubr.f32.mxu0 %v2881_v14  ;;  %v475_v25 = vmul.f32 0.00390625, %v449_v11  ;;  %v605_v32 = vmul.f32 %v2798_v10, %v570_v24  ;;  %v604_v37 = vmul.f32 %v2793_v3, %v569_v2 }
 0x12d   : > { %v2114_v48 = vpop.eup %2113  ;;  %v545_v33 = vadd.f32 1e-05, %v509_v9  ;;  %v498_v18 = vsub.f32 %v474_v44, %v486_v21  ;;  %v2886_v20 = vmul.f32 0.00390625, %v389_v22  ;;  %v527_v21 = vsub.f32 %v2699_v58, %v2832_v8 }
 0x12e   : > { %v572_v16 = vmul.f32 %v2114_v48, %v524_v13  ;;  %v571_v35 = vmul.f32 %v2114_v48, %v523_v7  ;;  %v2900_v50 = vadd.f32 %v2812_v27, %v605_v32  ;;  %v2908_v63 = vadd.f32 %v2805_v19, %v604_v37 }
 0x12f   : > { %2119 = vrsqrt.f32 %v545_v33  ;;  %v510_v6 = vmax.f32 %v498_v18, 0.0  ;;  %877 = vmatmul.mubr.f32.gmra.mrb[6].mxu0 %v2884_v23  ;;  %v452_v59 = vpop.xlane.xlu1 %451  ;;  %v487_v36 = vmul.f32 %v2886_v20, %v2886_v20  ;;  %v528_v46 = vsub.f32 %v2704_v61, %v2832_v8 }
 0x130   : > { %v392_v30 = vpop.xlane.xlu0 %391  ;;  %v476_v40 = vmul.f32 0.00390625, %v452_v59  ;;  %v607_v44 = vmul.f32 %v2798_v10, %v572_v16  ;;  %3789 = vst [vmem:[#allocation22_spill] sm:$0xff] %v2900_v50  ;;  %v606_v49 = vmul.f32 %v2793_v3, %v571_v35  ;;  %3790 = vst [vmem:[#allocation23_spill] sm:$0xff] %v2908_v63  ;;  %882 = vmatprep.mubr.f32.mxu0 %v2900_v50 }
 0x131   : > { %v2116_v1 = vpop.eup %2115  ;;  %v546_v38 = vadd.f32 1e-05, %v510_v6  ;;  %v2896_v39 = vmul.f32 0.00390625, %v392_v30  ;;  %v499_v0 = vsub.f32 %v475_v25, %v487_v36  ;;  %v530_v61 = vsub.f32 %v2716_v15, %v2850_v29 }
 0x132   : > { %v574_v52 = vmul.f32 %v2116_v1, %v526_v17  ;;  %v2912_v7 = vadd.f32 %v2812_v27, %v607_v44  ;;  %v573_v11 = vmul.f32 %v2116_v1, %v525_v57  ;;  %v2922_v48 = vadd.f32 %v2805_v19, %v606_v49 }
 0x133   : > { %2121 = vrsqrt.f32 %v546_v38  ;;  %v488_v62 = vmul.f32 %v2896_v39, %v2896_v39  ;;  %v511_v5 = vmax.f32 %v499_v0, 0.0  ;;  %883 = vmatmul.mubr.f32.gmra.mrb[8].mxu0 %v2908_v63  ;;  %v529_v2 = vsub.f32 %v2711_v12, %v2850_v29 }
 0x134   : > { %3791 = vst [vmem:[#allocation24_spill] sm:$0xff] %v2912_v7  ;;  %v609_v9 = vmul.f32 %v2798_v10, %v574_v52  ;;  %888 = vmatprep.mubr.f32.mxu0 %v2912_v7  ;;  %3792 = vst [vmem:[#allocation25_spill] sm:$0xff] %v2922_v48  ;;  %v608_v58 = vmul.f32 %v2793_v3, %v573_v11  ;;  %v532_v12 = vsub.f32 %v2728_v31, %v2864_v55 }
 0x135   : > { %v500_v34 = vsub.f32 %v476_v40, %v488_v62  ;;  %v2118_v13 = vpop.eup %2117  ;;  %v547_v22 = vadd.f32 1e-05, %v511_v5  ;;  %v531_v32 = vsub.f32 %v2723_v28, %v2864_v55  ;;  %v533_v0 = vsub.f32 %v2735_v42, %v2886_v20 }
 0x136   : > { %v2925_v33 = vadd.f32 %v2812_v27, %v609_v9  ;;  %v576_v24 = vmul.f32 %v2118_v13, %v528_v46  ;;  %v575_v25 = vmul.f32 %v2118_v13, %v527_v21  ;;  %v2936_v6 = vadd.f32 %v2805_v19, %v608_v58  ;;  %v734_v58 = vld [vmem:[#allocation7 + $0x78] sm:$0xff] }
 0x137   : > { %v512_v18 = vmax.f32 %v500_v34, 0.0  ;;  %2123 = vrsqrt.f32 %v547_v22  ;;  %889 = vmatmul.mubr.f32.gmra.mrb[10].mxu0 %v2922_v48  ;;  %v534_v28 = vsub.f32 %v2740_v45, %v2886_v20  ;;  %v536_v42 = vsub.f32 %v2752_v60, %v2896_v39 }
 0x138   : > { %3793 = vst [vmem:[#allocation26_spill] sm:$0xff] %v2925_v33  ;;  %v611_v35 = vmul.f32 %v2798_v10, %v576_v24  ;;  %894 = vmatprep.mubr.f32.mxu0 %v2925_v33  ;;  %3794 = vst [vmem:[#allocation27_spill] sm:$0xff] %v2936_v6  ;;  %v610_v15 = vmul.f32 %v2793_v3, %v575_v25  ;;  %v535_v45 = vsub.f32 %v2747_v56, %v2896_v39  ;;  %v731_v25 = vld [vmem:[#allocation7 + $0x60] sm:$0xff] }
 0x139   : > { %v2120_v8 = vpop.eup %2119  ;;  %v548_v16 = vadd.f32 1e-05, %v512_v18 }
 0x13a   : > { %v578_v59 = vmul.f32 %v2120_v8, %v530_v61  ;;  %v2939_v17 = vadd.f32 %v2812_v27, %v611_v35  ;;  %v577_v36 = vmul.f32 %v2120_v8, %v529_v2  ;;  %v2953_v38 = vadd.f32 %v2805_v19, %v610_v15  ;;  %v736_v8 = vld [vmem:[#allocation7 + $0x88] sm:$0xff]  ;;  %v738_v2 = vld [vmem:[#allocation7 + $0x98] sm:$0xff]  ;;  %v737_v35 = vld [vmem:[#allocation7 + $0x90] sm:$0xff] }
 0x13b   : > { %2125 = vrsqrt.f32 %v548_v16  ;;  %895 = vmatmul.mubr.f32.gmra.mrb[12].mxu0 %v2936_v6  ;;  %v735_v16 = vld [vmem:[#allocation7 + $0x80] sm:$0xff]  ;;  %v742_v15 = vld [vmem:[#allocation7 + $0xb8] sm:$0xff] }
 0x13c   : > { %3795 = vst [vmem:[#allocation28_spill] sm:$0xff] %v2939_v17  ;;  %v613_v29 = vmul.f32 %v2798_v10, %v578_v59  ;;  %900 = vmatprep.mubr.f32.mxu0 %v2939_v17  ;;  %3797 = vst [vmem:[#allocation30_spill] sm:$0xff] %v2953_v38  ;;  %v612_v40 = vmul.f32 %v2793_v3, %v577_v36  ;;  %v1984_v59 = vpack.c.bf16 %v737_v35, %v735_v16  ;;  %v764_v35 = vld [vmem:[#allocation7 + $0x168] sm:$0xff] }
 0x13d   : > { %v2122_v30 = vpop.eup %2121 }
 0x13e   : > { %v2950_v37 = vadd.f32 %v2812_v27, %v613_v29  ;;  %v580_v1 = vmul.f32 %v2122_v30, %v532_v12  ;;  %v579_v31 = vmul.f32 %v2122_v30, %v531_v32  ;;  %v2967_v52 = vadd.f32 %v2805_v19, %v612_v40  ;;  %v739_v12 = vld [vmem:[#allocation7 + $0xa0] sm:$0xff]  ;;  %v741_v29 = vld [vmem:[#allocation7 + $0xb0] sm:$0xff]  ;;  %v744_v32 = vld [vmem:[#allocation7 + $0xc8] sm:$0xff] }
 0x13f   : > { %901 = vmatmul.mubr.f32.gmra.mrb[14].mxu0 %v2953_v38  ;;  %v1988_v30 = vpack.c.bf16 %v741_v29, %v739_v12  ;;  %v768_v29 = vld [vmem:[#allocation7 + $0x188] sm:$0xff] }
 0x140   : > { %3796 = vst [vmem:[#allocation29_spill] sm:$0xff] %v2950_v37  ;;  %v615_v44 = vmul.f32 %v2798_v10, %v580_v1  ;;  %906 = vmatprep.mubr.f32.mxu0 %v2950_v37  ;;  %3799 = vst [vmem:[#allocation32_spill] sm:$0xff] %v2967_v52  ;;  %v614_v57 = vmul.f32 %v2793_v3, %v579_v31  ;;  %v746_v1 = vld [vmem:[#allocation7 + $0xd8] sm:$0xff]  ;;  %v743_v31 = vld [vmem:[#allocation7 + $0xc0] sm:$0xff] }
 0x141   : > { %v2124_v55 = vpop.eup %2123  ;;  %v1990_v40 = vpack.c.bf16 %v746_v1, %v744_v32  ;;  %v767_v1 = vld [vmem:[#allocation7 + $0x180] sm:$0xff] }
 0x142   : > { %v2964_v49 = vadd.f32 %v2812_v27, %v615_v44  ;;  %v582_v62 = vmul.f32 %v2124_v55, %v534_v28  ;;  %v581_v5 = vmul.f32 %v2124_v55, %v533_v0  ;;  %v2978_v46 = vadd.f32 %v2805_v19, %v614_v57  ;;  %v745_v44 = vld [vmem:[#allocation7 + $0xd0] sm:$0xff]  ;;  %v748_v28 = vld [vmem:[#allocation7 + $0xe8] sm:$0xff]  ;;  %v750_v55 = vld [vmem:[#allocation7 + $0xf8] sm:$0xff] }
 0x143   : > { %907 = vmatmul.mubr.f32.gmra.mrb[16].mxu0 %v2967_v52  ;;  %v1992_v0 = vpack.c.bf16 %v745_v44, %v743_v31  ;;  %v1994_v57 = vpack.c.bf16 %v750_v55, %v748_v28  ;;  %v772_v44 = vld [vmem:[#allocation7 + $0x1a8] sm:$0xff]  ;;  %v771_v55 = vld [vmem:[#allocation7 + $0x1a0] sm:$0xff] }
 0x144   : > { %3798 = vst [vmem:[#allocation31_spill] sm:$0xff] %v2964_v49  ;;  %v617_v20 = vmul.f32 %v2798_v10, %v582_v62  ;;  %912 = vmatprep.mubr.f32.mxu0 %v2964_v49  ;;  %3800 = vst [vmem:[#allocation33_spill] sm:$0xff] %v2978_v46  ;;  %v616_v11 = vmul.f32 %v2793_v3, %v581_v5  ;;  %v747_v62 = vld [vmem:[#allocation7 + $0xe0] sm:$0xff]  ;;  %v749_v5 = vld [vmem:[#allocation7 + $0xf0] sm:$0xff] }
 0x145   : > { %v2126_v9 = vpop.eup %2125 }
 0x146   : > { %v584_v21 = vmul.f32 %v2126_v9, %v536_v42  ;;  %v2981_v34 = vadd.f32 %v2812_v27, %v617_v20  ;;  %v583_v60 = vmul.f32 %v2126_v9, %v535_v45  ;;  %v2991_v39 = vadd.f32 %v2805_v19, %v616_v11  ;;  %v752_v9 = vld [vmem:[#allocation7 + $0x108] sm:$0xff]  ;;  %v754_v45 = vld [vmem:[#allocation7 + $0x118] sm:$0xff]  ;;  %v753_v11 = vld [vmem:[#allocation7 + $0x110] sm:$0xff] }
 0x147   : > { %913 = vmatmul.mubr.f32.gmra.mrb[18].mxu0 %v2978_v46  ;;  %v1996_v42 = vpack.c.bf16 %v749_v5, %v747_v62  ;;  %v1998_v20 = vpack.c.bf16 %v754_v45, %v752_v9  ;;  %v776_v5 = vld [vmem:[#allocation7 + $0x1c8] sm:$0xff]  ;;  %v775_v45 = vld [vmem:[#allocation7 + $0x1c0] sm:$0xff] }
 0x148   : > { %3801 = vst [vmem:[#allocation34_spill] sm:$0xff] %v2981_v34  ;;  %v619_v13 = vmul.f32 %v2798_v10, %v584_v21  ;;  %918 = vmatprep.mubr.f32.mxu0 %v2981_v34  ;;  %3803 = vst [vmem:[#allocation36_spill] sm:$0xff] %v2991_v39  ;;  %v618_v22 = vmul.f32 %v2793_v3, %v583_v60  ;;  %v732_v10 = vld [vmem:[#allocation7 + $0x68] sm:$0xff]  ;;  %v1982_v3 = vpack.c.bf16 %v738_v2, %v736_v8  ;;  %v751_v21 = vld [vmem:[#allocation7 + $0x100] sm:$0xff] }
 0x149   : > { %v1978_v24 = vpack.c.bf16 %v734_v58, %v732_v10  ;;  %v2000_v60 = vpack.c.bf16 %v753_v11, %v751_v21  ;;  %v755_v58 = vld [vmem:[#allocation7 + $0x120] sm:$0xff]  ;;  %v780_v11 = vld [vmem:[#allocation7 + $0x1e8] sm:$0xff] }
 0x14a   : > { %v2988_v56 = vadd.f32 %v2812_v27, %v619_v13  ;;  %v2997_v18 = vadd.f32 %v2805_v19, %v618_v22  ;;  %v733_v27 = vld [vmem:[#allocation7 + $0x70] sm:$0xff]  ;;  %v740_v19 = vld [vmem:[#allocation7 + $0xa8] sm:$0xff]  ;;  %v758_v22 = vld [vmem:[#allocation7 + $0x138] sm:$0xff] }
 0x14b   : > { %919 = vmatmul.mubr.f32.gmra.mrb[20].mxu0 %v2991_v39  ;;  %v1980_v61 = vpack.c.bf16 %v733_v27, %v731_v25  ;;  %1979 = vmatprep.subr.bf16.mxu1 %v1978_v24  ;;  %v1986_v36 = vpack.c.bf16 %v742_v15, %v740_v19  ;;  %v756_v13 = vld [vmem:[#allocation7 + $0x128] sm:$0xff]  ;;  %v757_v24 = vld [vmem:[#allocation7 + $0x130] sm:$0xff]  ;;  %v759_v2 = vld [vmem:[#allocation7 + $0x140] sm:$0xff] }
 0x14c   : > { %3802 = vst [vmem:[#allocation35_spill] sm:$0xff] %v2988_v56  ;;  %924 = vmatprep.mubr.f32.mxu0 %v2988_v56  ;;  %3804 = vst [vmem:[#allocation37_spill] sm:$0xff] %v2997_v18  ;;  %v2002_v10 = vpack.c.bf16 %v758_v22, %v756_v13  ;;  %v2004_v25 = vpack.c.bf16 %v757_v24, %v755_v58  ;;  %v760_v27 = vld [vmem:[#allocation7 + $0x148] sm:$0xff]  ;;  %v763_v15 = vld [vmem:[#allocation7 + $0x160] sm:$0xff] }
 0x14d   : > { %1981 = vmatpush1.bf16.msra.mxu1 %v1980_v61  ;;  %v762_v61 = vld [vmem:[#allocation7 + $0x158] sm:$0xff]  ;;  %v779_v22 = vld [vmem:[#allocation7 + $0x1e0] sm:$0xff] }
 0x14e   : > { %1983 = vmatprep.subr.bf16.mxu1 %v1982_v3  ;;  %v2006_v8 = vpack.c.bf16 %v762_v61, %v760_v27  ;;  %v761_v3 = vld [vmem:[#allocation7 + $0x150] sm:$0xff]  ;;  %v331_v24 = vld [vmem:[%s3691_s4] sm:$0x3] }
 0x14f   : > { %925 = vmatmul.mubr.f32.gmra.mrb[22].mxu0 %v2997_v18  ;;  %v2008_v16 = vpack.c.bf16 %v761_v3, %v759_v2  ;;  %v3007_v27 = vrot.slane %v331_v24, %v2785_v51 }
 0x151   : > { %1985 = vmatpush1.bf16.msra.mxu1 %v1984_v59  ;;  %v766_v59 = vld [vmem:[#allocation7 + $0x178] sm:$0xff] }
 0x152   : > { %1987 = vmatprep.subr.bf16.mxu1 %v1986_v36  ;;  %v2010_v19 = vpack.c.bf16 %v766_v59, %v764_v35  ;;  %v765_v36 = vld [vmem:[#allocation7 + $0x170] sm:$0xff] }
 0x153   : > { %v2012_v12 = vpack.c.bf16 %v765_v36, %v763_v15 }
 0x155   : > { %1989 = vmatpush1.bf16.msra.mxu1 %v1988_v30  ;;  %v770_v30 = vld [vmem:[#allocation7 + $0x198] sm:$0xff] }
 0x156   : > { %1991 = vmatprep.subr.bf16.mxu1 %v1990_v40  ;;  %v2014_v32 = vpack.c.bf16 %v770_v30, %v768_v29  ;;  %v769_v40 = vld [vmem:[#allocation7 + $0x190] sm:$0xff] }
 0x157   : > { %v2016_v31 = vpack.c.bf16 %v769_v40, %v767_v1 }
 0x159   : > { %1993 = vmatpush1.bf16.msra.mxu1 %v1992_v0  ;;  %v774_v0 = vld [vmem:[#allocation7 + $0x1b8] sm:$0xff] }
 0x15a   : > { %1995 = vmatprep.subr.bf16.mxu1 %v1994_v57  ;;  %v2018_v28 = vpack.c.bf16 %v774_v0, %v772_v44  ;;  %v773_v57 = vld [vmem:[#allocation7 + $0x1b0] sm:$0xff] }
 0x15b   : > { %v2020_v62 = vpack.c.bf16 %v773_v57, %v771_v55 }
 0x15d   : > { %1997 = vmatpush1.bf16.msra.mxu1 %v1996_v42  ;;  %v778_v42 = vld [vmem:[#allocation7 + $0x1d8] sm:$0xff] }
 0x15e   : > { %1999 = vmatprep.subr.bf16.mxu1 %v1998_v20  ;;  %v2022_v9 = vpack.c.bf16 %v778_v42, %v776_v5  ;;  %v777_v20 = vld [vmem:[#allocation7 + $0x1d0] sm:$0xff] }
 0x15f   : > { %v2024_v21 = vpack.c.bf16 %v777_v20, %v775_v45 }
 0x161   : > { %2001 = vmatpush1.bf16.msra.mxu1 %v2000_v60  ;;  %v782_v60 = vld [vmem:[#allocation7 + $0x1f8] sm:$0xff] }
 0x162   : > { %2003 = vmatprep.subr.bf16.mxu1 %v2002_v10  ;;  %v2026_v13 = vpack.c.bf16 %v782_v60, %v780_v11  ;;  %v781_v10 = vld [vmem:[#allocation7 + $0x1f0] sm:$0xff] }
 0x163   : > { %v2028_v58 = vpack.c.bf16 %v781_v10, %v779_v22 }
 0x165   : > { %2005 = vmatpush1.bf16.msra.mxu1 %v2004_v25  ;;  %v3004_v25 = vrot.slane %v331_v24, %v2778_v43 }
 0x166   : > { %2007 = vmatprep.subr.bf16.mxu1 %v2006_v8 }
 0x169   : > { %2009 = vmatpush1.bf16.msra.mxu1 %v2008_v16 }
 0x16a   : > { %2011 = vmatprep.subr.bf16.mxu1 %v2010_v19 }
 0x16d   : > { %2013 = vmatpush1.bf16.msra.mxu1 %v2012_v12 }
 0x16e   : > { %2015 = vmatprep.subr.bf16.mxu1 %v2014_v32 }
 0x171   : > { %2017 = vmatpush1.bf16.msra.mxu1 %v2016_v31 }
 0x172   : > { %2019 = vmatprep.subr.bf16.mxu1 %v2018_v28 }
 0x175   : > { %2021 = vmatpush1.bf16.msra.mxu1 %v2020_v62 }
 0x176   : > { %2023 = vmatprep.subr.bf16.mxu1 %v2022_v9 }
 0x179   : > { %2025 = vmatpush1.bf16.msra.mxu1 %v2024_v21 }
 0x17a   : > { %2027 = vmatprep.subr.bf16.mxu1 %v2026_v13 }
 0x17d   : > { %2029 = vmatpush1.bf16.msra.mxu1 %v2028_v58 }
 0x1f6   : > { %v860_v61 = vpop.f32.mrb[0].mxu0 }
 0x1f7   : > { %v861_v8 = vadd.f32 %v860_v61, %v3004_v25  ;;  %v862_v2 = vpop.f32.mrb[1].mxu0 }
 0x1f8   : > { %v863_v3 = vadd.f32 %v862_v2, %v3007_v27 }
 0x1f9   : > { %v3011_v16 = vmul.f32 0.70710677, %v861_v8 }
 0x1fa   : > { %v3013_v35 = vmul.f32 0.70710677, %v863_v3  ;;  %v866_v59 = vpop.f32.mrb[2].mxu0 }
 0x1fb   : > { %v955_v19 = vand.u32 2147483647, %v3011_v16  ;;  %v867_v15 = vadd.f32 %v866_v59, %v3004_v25  ;;  %v868_v36 = vpop.f32.mrb[3].mxu0  ;;  %vm1435_vm1 = vcmp.lt.f32.partialorder %v3011_v16, 0.0 }
 0x1fc   : > { %v869_v12 = vadd.f32 %v868_v36, %v3007_v27  ;;  %v956_v29 = vand.u32 2147483647, %v3013_v35  ;;  %vm1436_vm0 = vcmp.lt.f32.partialorder %v3013_v35, 0.0 }
 0x1fd   : > { %v3019_v30 = vmul.f32 0.70710677, %v867_v15  ;;  %v1291_v32 = vsub.f32 0.0, %v955_v19  ;;  %v979_v55 = vmul.f32 0.3275911, %v955_v19 }
 0x1fe   : > { %v872_v1 = vpop.f32.mrb[4].mxu0  ;;  %v3021_v40 = vmul.f32 0.70710677, %v869_v12  ;;  %v1292_v44 = vsub.f32 0.0, %v956_v29  ;;  %v980_v42 = vmul.f32 0.3275911, %v956_v29 }
 0x1ff   : > { %v874_v31 = vpop.f32.mrb[5].mxu0  ;;  %v957_v0 = vand.u32 2147483647, %v3019_v30  ;;  %v1315_v57 = vmul.f32 %v1291_v32, %v955_v19  ;;  %v873_v62 = vadd.f32 %v872_v1, %v3004_v25  ;;  %v1003_v13 = vadd.f32 1.0, %v979_v55 }
 0x200   : > { %v958_v9 = vand.u32 2147483647, %v3021_v40  ;;  %v3027_v45 = vadd.f32 %v874_v31, %v3007_v27  ;;  %v1316_v21 = vmul.f32 %v1292_v44, %v956_v29  ;;  %v1004_v24 = vadd.f32 1.0, %v980_v42 }
 0x201   : > { %v3029_v20 = vmul.f32 0.70710677, %v873_v62  ;;  %v1293_v11 = vsub.f32 0.0, %v957_v0  ;;  %v1339_v22 = vmul.f32 1.442695, %v1315_v57  ;;  %v3045_v1 = vmul.f32 0.5, %v861_v8 }
 0x202   : > { %v878_v28 = vpop.f32.mrb[6].mxu0  ;;  %v3032_v60 = vmul.f32 0.70710677, %v3027_v45  ;;  %v981_v10 = vmul.f32 0.3275911, %v957_v0  ;;  %v1294_v36 = vsub.f32 0.0, %v958_v9  ;;  %2127 = vrcp.f32 %v1003_v13 }
 0x203   : > { %v880_v5 = vpop.f32.mrb[7].mxu0  ;;  %v3035_v58 = vadd.f32 %v878_v28, %v3004_v25  ;;  %v982_v61 = vmul.f32 0.3275911, %v958_v9  ;;  %v959_v2 = vand.u32 2147483647, %v3029_v20  ;;  %v1317_v44 = vmul.f32 %v1293_v11, %v957_v0 }
 0x204   : > { %v3039_v59 = vadd.f32 %v880_v5, %v3007_v27  ;;  %v960_v29 = vand.u32 2147483647, %v3032_v60  ;;  %v1341_v31 = vmul.f32 1.442695, %v1316_v21  ;;  %v1005_v55 = vadd.f32 1.0, %v981_v10 }
 0x205   : > { %v3043_v32 = vmul.f32 0.70710677, %v3035_v58  ;;  %v3050_v57 = vmul.f32 0.5, %v867_v15  ;;  %v3052_v42 = vmul.f32 0.5, %v863_v3  ;;  %2129 = vrcp.f32 %v1004_v24 }
 0x206   : > { %v884_v19 = vpop.f32.mrb[8].mxu0  ;;  %v3048_v28 = vmul.f32 0.70710677, %v3039_v59  ;;  %v1006_v56 = vadd.f32 1.0, %v982_v61  ;;  %v1295_v18 = vsub.f32 0.0, %v959_v2  ;;  %2131 = vpow2.f32 %v1339_v22 }
 0x207   : > { %v886_v5 = vpop.f32.mrb[9].mxu0  ;;  %v961_v34 = vand.u32 2147483647, %v3043_v32  ;;  %v1318_v8 = vmul.f32 %v1294_v36, %v958_v9  ;;  %v1296_v21 = vsub.f32 0.0, %v960_v29  ;;  %2133 = vpow2.f32 %v1341_v31 }
 0x208   : > { %v962_v0 = vand.u32 2147483647, %v3048_v28  ;;  %v1343_v13 = vmul.f32 1.442695, %v1317_v44  ;;  %v3056_v10 = vmul.f32 0.5, %v869_v12  ;;  %2135 = vrcp.f32 %v1005_v55 }
 0x209   : > { %v983_v15 = vmul.f32 0.3275911, %v959_v2  ;;  %v3058_v3 = vmul.f32 0.5, %v873_v62  ;;  %v984_v24 = vmul.f32 0.3275911, %v960_v29  ;;  %v3061_v61 = vadd.f32 %v884_v19, %v3004_v25 }
 0x20a   : > { %v890_v39 = vpop.f32.mrb[10].mxu0  ;;  %2137 = vrcp.f32 %v1006_v56  ;;  %v1319_v49 = vmul.f32 %v1295_v18, %v959_v2  ;;  %v1297_v22 = vsub.f32 0.0, %v961_v34  ;;  %v3064_v9 = vadd.f32 %v886_v5, %v3007_v27 }
 0x20b   : > { %v892_v11 = vpop.f32.mrb[11].mxu0  ;;  %3805 = vst [vmem:[#allocation38_spill] sm:$0xff] %v3058_v3  ;;  %v1345_v46 = vmul.f32 1.442695, %v1318_v8  ;;  %v1320_v31 = vmul.f32 %v1296_v21, %v960_v29  ;;  %v1298_v44 = vsub.f32 0.0, %v962_v0  ;;  %2139 = vpow2.f32 %v1343_v13 }
 0x20c   : > { %v3067_v12 = vmul.f32 0.70710677, %v3061_v61  ;;  %v1007_v62 = vadd.f32 1.0, %v983_v15  ;;  %v985_v37 = vmul.f32 0.3275911, %v961_v34  ;;  %v1008_v56 = vadd.f32 1.0, %v984_v24  ;;  %v3080_v15 = vpop.eup %2127 }
 0x20d   : > { %v3070_v19 = vmul.f32 0.70710677, %v3064_v9  ;;  %v986_v18 = vmul.f32 0.3275911, %v962_v0  ;;  %v3074_v5 = vadd.f32 %v890_v39, %v3004_v25  ;;  %v1347_v8 = vmul.f32 1.442695, %v1319_v49 }
 0x20e   : > { %v896_v36 = vpop.f32.mrb[12].mxu0  ;;  %3806 = vst [vmem:[#allocation39_spill] sm:$0xff] %v3067_v12  ;;  %v963_v2 = vand.u32 2147483647, %v3067_v12  ;;  %v1321_v29 = vmul.f32 %v1297_v22, %v961_v34  ;;  %v3078_v52 = vadd.f32 %v892_v11, %v3007_v27  ;;  %2141 = vpow2.f32 %v1345_v46 }
 0x20f   : > { %v898_v55 = vpop.f32.mrb[13].mxu0  ;;  %3807 = vst [vmem:[#allocation40_spill] sm:$0xff] %v3070_v19  ;;  %v964_v21 = vand.u32 2147483647, %v3070_v19  ;;  %v1349_v17 = vmul.f32 1.442695, %v1320_v31  ;;  %v1322_v38 = vmul.f32 %v1298_v44, %v962_v0  ;;  %v3085_v33 = vpop.eup %2129  ;;  %2143 = vrcp.f32 %v1007_v62 }
 0x210   : > { %v3083_v24 = vmul.f32 0.70710677, %v3074_v5  ;;  %v1009_v39 = vadd.f32 1.0, %v985_v37  ;;  %v987_v49 = vmul.f32 0.3275911, %v963_v2  ;;  %v3090_v22 = vpop.eup %2131  ;;  %2145 = vrcp.f32 %v1008_v56 }
 0x211   : > { %v3088_v34 = vmul.f32 0.70710677, %v3078_v52  ;;  %v1010_v11 = vadd.f32 1.0, %v986_v18  ;;  %v1299_v6 = vsub.f32 0.0, %v963_v2  ;;  %v3093_v0 = vpop.eup %2133  ;;  %2147 = vpow2.f32 %v1347_v8 }
 0x212   : > { %v902_v13 = vpop.f32.mrb[14].mxu0  ;;  %3808 = vst [vmem:[#allocation41_spill] sm:$0xff] %v3083_v24  ;;  %v965_v46 = vand.u32 2147483647, %v3083_v24  ;;  %v1351_v44 = vmul.f32 1.442695, %v1321_v29  ;;  %v3098_v48 = vpop.eup %2135  ;;  %2149 = vpow2.f32 %v1349_v17  ;;  %v3117_v26 = vadd.f32 %v898_v55, %v3007_v27 }
 0x213   : > { %3809 = vst [vmem:[#allocation42_spill] sm:$0xff] %v3088_v34  ;;  %v904_v31 = vpop.f32.mrb[15].mxu0  ;;  %v1300_v7 = vsub.f32 0.0, %v964_v21  ;;  %v966_v62 = vand.u32 2147483647, %v3088_v34  ;;  %v3101_v50 = vmul.f32 0.5, %v3027_v45  ;;  %2151 = vrcp.f32 %v1009_v39 }
 0x214   : > { %v3104_v56 = vmul.f32 0.5, %v3035_v58  ;;  %v1353_v18 = vmul.f32 1.442695, %v1322_v38  ;;  %v3108_v14 = vpop.eup %2137  ;;  %v3111_v8 = vmul.f32 0.5, %v3039_v59  ;;  %v1011_v29 = vadd.f32 1.0, %v987_v49 }
 0x215   : > { %3810 = vst [vmem:[#allocation43_spill] sm:$0xff] %v3101_v50  ;;  %v988_v23 = vmul.f32 0.3275911, %v964_v21  ;;  %2153 = vrcp.f32 %v1010_v11  ;;  %v1323_v41 = vmul.f32 %v1299_v6, %v963_v2  ;;  %v1301_v17 = vsub.f32 0.0, %v965_v46  ;;  %v3114_v47 = vpop.eup %2139 }
 0x216   : > { %v3096_v37 = vpop.f32.mrb[16].mxu0  ;;  %3811 = vst [vmem:[#allocation44_spill] sm:$0xff] %v3104_v56  ;;  %3812 = vst [vmem:[#allocation45_spill] sm:$0xff] %v3111_v8  ;;  %v897_v45 = vadd.f32 %v896_v36, %v3004_v25  ;;  %2155 = vpow2.f32 %v1351_v44  ;;  %v1324_v58 = vmul.f32 %v1300_v7, %v964_v21  ;;  %v1302_v38 = vsub.f32 0.0, %v966_v62 }
 0x217   : > { %v3106_v63 = vpop.f32.mrb[17].mxu0  ;;  %2157 = vpow2.f32 %v1353_v18  ;;  %v3122_v59 = vmul.f32 0.5, %v3061_v61  ;;  %v989_v39 = vmul.f32 0.3275911, %v965_v46  ;;  %v1012_v36 = vadd.f32 1.0, %v988_v23 }
 0x218   : > { %v3124_v49 = vmul.f32 0.70710677, %v897_v45  ;;  %2159 = vrcp.f32 %v1011_v29  ;;  %v990_v2 = vmul.f32 0.3275911, %v966_v62  ;;  %v3129_v7 = vmul.f32 0.70710677, %v3117_v26  ;;  %v3131_v21 = vpop.eup %2141 }
 0x219   : > { %3813 = vst [vmem:[#allocation46_spill] sm:$0xff] %v3122_v59  ;;  %v1355_v55 = vmul.f32 1.442695, %v1323_v41  ;;  %v1325_v11 = vmul.f32 %v1301_v17, %v965_v46  ;;  %v903_v61 = vadd.f32 %v902_v13, %v3004_v25  ;;  %v3135_v18 = vpop.eup %2143  ;;  %v1357_v53 = vmul.f32 1.442695, %v1324_v58 }
 0x21a   : > { %v3119_v4 = vpop.f32.mrb[18].mxu0  ;;  %3814 = vst [vmem:[#allocation47_spill] sm:$0xff] %v3124_v49  ;;  %3815 = vst [vmem:[#allocation48_spill] sm:$0xff] %v3129_v7  ;;  %v967_v44 = vand.u32 2147483647, %v3124_v49  ;;  %v1326_v54 = vmul.f32 %v1302_v38, %v966_v62  ;;  %v3139_v23 = vadd.f32 %v904_v31, %v3007_v27  ;;  %v3143_v43 = vpop.eup %2145  ;;  %v1013_v59 = vadd.f32 1.0, %v989_v39 }
 0x21b   : > { %v3126_v6 = vpop.f32.mrb[19].mxu0  ;;  %v968_v51 = vand.u32 2147483647, %v3129_v7  ;;  %v3145_v17 = vmul.f32 0.70710677, %v903_v61  ;;  %v3147_v49 = vpop.eup %2147  ;;  %2161 = vrcp.f32 %v1012_v36  ;;  %v1014_v13 = vadd.f32 1.0, %v990_v2 }
 0x21c   : > { %v991_v41 = vmul.f32 0.3275911, %v967_v44  ;;  %v1303_v46 = vsub.f32 0.0, %v967_v44  ;;  %v3150_v62 = vmul.f32 0.70710677, %v3139_v23  ;;  %v3152_v38 = vpop.eup %2149  ;;  %2163 = vpow2.f32 %v1355_v55 }
 0x21d   : > { %3816 = vst [vmem:[#allocation49_spill] sm:$0xff] %v3145_v17  ;;  %v992_v58 = vmul.f32 0.3275911, %v968_v51  ;;  %v1359_v31 = vmul.f32 1.442695, %v1325_v11  ;;  %v1304_v7 = vsub.f32 0.0, %v968_v51  ;;  %v3157_v24 = vpop.eup %2151  ;;  %2165 = vpow2.f32 %v1357_v53 }
 0x21e   : > { %v3141_v29 = vpop.f32.mrb[20].mxu0  ;;  %3817 = vst [vmem:[#allocation50_spill] sm:$0xff] %v3150_v62  ;;  %v969_v34 = vand.u32 2147483647, %v3145_v17  ;;  %v3160_v12 = vmul.f32 0.5, %v3064_v9  ;;  %2167 = vrcp.f32 %v1013_v59  ;;  %v3168_v55 = vmul.f32 0.5, %v3074_v5 }
 0x21f   : > { %v3155_v39 = vpop.f32.mrb[21].mxu0  ;;  %v1361_v36 = vmul.f32 1.442695, %v1326_v54  ;;  %v970_v2 = vand.u32 2147483647, %v3150_v62  ;;  %v3165_v56 = vpop.eup %2153  ;;  %v1015_v11 = vadd.f32 1.0, %v991_v41  ;;  %v1327_v17 = vmul.f32 %v1303_v46, %v967_v44 }
 0x220   : > { %3818 = vst [vmem:[#allocation51_spill] sm:$0xff] %v3160_v12  ;;  %3819 = vst [vmem:[#allocation52_spill] sm:$0xff] %v3168_v55  ;;  %v3172_v3 = vpop.eup %2155  ;;  %2169 = vrcp.f32 %v1014_v13  ;;  %v3175_v53 = vmul.f32 0.5, %v3078_v52  ;;  %v3177_v54 = vmul.f32 0.5, %v897_v45  ;;  %v1016_v9 = vadd.f32 1.0, %v992_v58 }
 0x221   : > { %v3179_v12 = vpop.eup %2157  ;;  %2171 = vpow2.f32 %v1359_v31  ;;  %v1328_v59 = vmul.f32 %v1304_v7, %v968_v51  ;;  %v1305_v62 = vsub.f32 0.0, %v969_v34  ;;  %v909_v5 = vadd.f32 %v3096_v37, %v3004_v25 }
 0x222   : > { %v3163_v19 = vpop.f32.mrb[22].mxu0  ;;  %3820 = vst [vmem:[#allocation53_spill] sm:$0xff] %v3175_v53  ;;  %3821 = vst [vmem:[#allocation54_spill] sm:$0xff] %v3177_v54  ;;  %v3183_v44 = vpop.eup %2159  ;;  %2173 = vpow2.f32 %v1361_v36  ;;  %v993_v41 = vmul.f32 0.3275911, %v969_v34  ;;  %v1306_v46 = vsub.f32 0.0, %v970_v2  ;;  %v911_v52 = vadd.f32 %v3106_v63, %v3007_v27 }
 0x223   : > { %v3170_v8 = vpop.f32.mrb[23].mxu0  ;;  %3822 = vst [vmem:[#allocation55_spill] sm:$0xff] %v3183_v44  ;;  %2175 = vrcp.f32 %v1015_v11  ;;  %v1363_v45 = vmul.f32 1.442695, %v1327_v17  ;;  %v3188_v13 = vmul.f32 0.5, %v3117_v26  ;;  %v3192_v51 = vmul.f32 0.5, %v903_v61 }
 0x224   : > { %v3190_v58 = vmul.f32 0.70710677, %v909_v5  ;;  %2177 = vrcp.f32 %v1016_v9  ;;  %v994_v7 = vmul.f32 0.3275911, %v970_v2  ;;  %v3194_v37 = vmul.f32 0.70710677, %v911_v52 }
 0x225   : > { %3823 = vst [vmem:[#allocation56_spill] sm:$0xff] %v3188_v13  ;;  %3825 = vst [vmem:[#allocation58_spill] sm:$0xff] %v3192_v51  ;;  %v1365_v31 = vmul.f32 1.442695, %v1328_v59  ;;  %v1329_v36 = vmul.f32 %v1305_v62, %v969_v34  ;;  %v915_v63 = vadd.f32 %v3119_v4, %v3004_v25  ;;  %v3199_v11 = vpop.eup %2161  ;;  %v1017_v17 = vadd.f32 1.0, %v993_v41 }
 0x226   : > { %3824 = vst [vmem:[#allocation57_spill] sm:$0xff] %v3190_v58  ;;  %3826 = vst [vmem:[#allocation59_spill] sm:$0xff] %v3194_v37  ;;  %v971_v54 = vand.u32 2147483647, %v3190_v58  ;;  %v1330_v26 = vmul.f32 %v1306_v46, %v970_v2  ;;  %v972_v55 = vand.u32 2147483647, %v3194_v37  ;;  %v3204_v61 = vadd.f32 %v3126_v6, %v3007_v27  ;;  %v3206_v9 = vpop.eup %2163 }
 0x227   : > { %3827 = vst [vmem:[#allocation60_spill] sm:$0xff] %v3206_v9  ;;  %2179 = vpow2.f32 %v1363_v45  ;;  %v3208_v62 = vmul.f32 0.70710677, %v915_v63  ;;  %v3210_v58 = vpop.eup %2165  ;;  %v1018_v4 = vadd.f32 1.0, %v994_v7  ;;  %v1367_v6 = vmul.f32 1.442695, %v1329_v36 }
 0x228   : > { %v995_v59 = vmul.f32 0.3275911, %v971_v54  ;;  %v1307_v34 = vsub.f32 0.0, %v971_v54  ;;  %3829 = vst [vmem:[#allocation62_spill] sm:$0xff] %v3210_v58  ;;  %v996_v51 = vmul.f32 0.3275911, %v972_v55  ;;  %v3215_v41 = vpop.eup %2167  ;;  %2181 = vpow2.f32 %v1365_v31 }
 0x229   : > { %3828 = vst [vmem:[#allocation61_spill] sm:$0xff] %v3208_v62  ;;  %v1308_v13 = vsub.f32 0.0, %v972_v55  ;;  %v3213_v2 = vmul.f32 0.70710677, %v3204_v61  ;;  %3831 = vst [vmem:[#allocation64_spill] sm:$0xff] %v3215_v41  ;;  %2183 = vrcp.f32 %v1017_v17  ;;  %v3221_v9 = vmul.f32 0.5, %v3139_v23 }
 0x22a   : > { %v1331_v46 = vmul.f32 %v1307_v34, %v971_v54  ;;  %v973_v37 = vand.u32 2147483647, %v3208_v62  ;;  %v3218_v45 = vpop.eup %2169  ;;  %v1369_v53 = vmul.f32 1.442695, %v1330_v26  ;;  %v1019_v44 = vadd.f32 1.0, %v995_v59 }
 0x22b   : > { %3830 = vst [vmem:[#allocation63_spill] sm:$0xff] %v3213_v2  ;;  %3832 = vst [vmem:[#allocation65_spill] sm:$0xff] %v3221_v9  ;;  %v974_v7 = vand.u32 2147483647, %v3213_v2  ;;  %v3224_v58 = vpop.eup %2171  ;;  %v3226_v50 = vmul.f32 0.5, %v909_v5  ;;  %v1332_v41 = vmul.f32 %v1308_v13, %v972_v55  ;;  %2185 = vrcp.f32 %v1018_v4 }
 0x22c   : > { %v1309_v31 = vsub.f32 0.0, %v973_v37  ;;  %v3228_v36 = vpop.eup %2173  ;;  %v1020_v54 = vadd.f32 1.0, %v996_v51  ;;  %v997_v34 = vmul.f32 0.3275911, %v973_v37  ;;  %2187 = vpow2.f32 %v1367_v6 }
 0x22d   : > { %3833 = vst [vmem:[#allocation66_spill] sm:$0xff] %v3226_v50  ;;  %v1310_v62 = vsub.f32 0.0, %v974_v7  ;;  %v3230_v17 = vpop.eup %2175  ;;  %v1371_v23 = vmul.f32 1.442695, %v1331_v46  ;;  %v998_v26 = vmul.f32 0.3275911, %v974_v7  ;;  %v3234_v2 = vadd.f32 %v3141_v29, %v3004_v25 }
 0x22e   : > { %v3236_v59 = vpop.eup %2177  ;;  %2189 = vpow2.f32 %v1369_v53  ;;  %v1333_v55 = vmul.f32 %v1309_v31, %v973_v37  ;;  %v3240_v13 = vadd.f32 %v3155_v39, %v3007_v27  ;;  %v1373_v51 = vmul.f32 1.442695, %v1332_v41 }
 0x22f   : > { %3834 = vst [vmem:[#allocation67_spill] sm:$0xff] %v3234_v2  ;;  %v1334_v5 = vmul.f32 %v1310_v62, %v974_v7  ;;  %2191 = vrcp.f32 %v1019_v44  ;;  %v3242_v4 = vmul.f32 0.5, %v911_v52  ;;  %v3245_v6 = vmul.f32 0.70710677, %v3234_v2 }
 0x230   : > { %3835 = vst [vmem:[#allocation68_spill] sm:$0xff] %v3240_v13  ;;  %2193 = vrcp.f32 %v1020_v54  ;;  %v1021_v46 = vadd.f32 1.0, %v997_v34  ;;  %v3247_v29 = vmul.f32 0.5, %v915_v63  ;;  %v3250_v50 = vmul.f32 0.70710677, %v3240_v13 }
 0x231   : > { %3836 = vst [vmem:[#allocation69_spill] sm:$0xff] %v3242_v4  ;;  %3837 = vst [vmem:[#allocation70_spill] sm:$0xff] %v3245_v6  ;;  %v3252_v53 = vpop.eup %2179  ;;  %2195 = vpow2.f32 %v1371_v23  ;;  %v1022_v37 = vadd.f32 1.0, %v998_v26  ;;  %v975_v39 = vand.u32 2147483647, %v3245_v6  ;;  %v3257_v44 = vadd.f32 %v3163_v19, %v3004_v25 }
 0x232   : > { %3838 = vst [vmem:[#allocation71_spill] sm:$0xff] %v3247_v29  ;;  %3839 = vst [vmem:[#allocation72_spill] sm:$0xff] %v3250_v50  ;;  %v1375_v52 = vmul.f32 1.442695, %v1333_v55  ;;  %v1377_v62 = vmul.f32 1.442695, %v1334_v5  ;;  %v3262_v63 = vadd.f32 %v3170_v8, %v3007_v27  ;;  %v3264_v7 = vpop.eup %2181  ;;  %2197 = vpow2.f32 %v1373_v51 }
 0x233   : > { %3840 = vst [vmem:[#allocation73_spill] sm:$0xff] %v3257_v44  ;;  %v976_v41 = vand.u32 2147483647, %v3250_v50  ;;  %v999_v31 = vmul.f32 0.3275911, %v975_v39  ;;  %v1311_v54 = vsub.f32 0.0, %v975_v39  ;;  %v3269_v23 = vpop.eup %2183  ;;  %2199 = vrcp.f32 %v1021_v46 }
 0x234   : > { %3841 = vst [vmem:[#allocation74_spill] sm:$0xff] %v3262_v63  ;;  %v3267_v34 = vmul.f32 0.70710677, %v3257_v44  ;;  %v3272_v26 = vmul.f32 0.70710677, %v3262_v63  ;;  %2201 = vrcp.f32 %v1022_v37  ;;  %vm1438_vm2 = vcmp.lt.f32.partialorder %v3021_v40, 0.0 }
 0x235   : > { %v1000_v25 = vmul.f32 0.3275911, %v976_v41  ;;  %v1312_v19 = vsub.f32 0.0, %v976_v41  ;;  %v1023_v55 = vadd.f32 1.0, %v999_v31  ;;  %v1335_v27 = vmul.f32 %v1311_v54, %v975_v39  ;;  %v3275_v5 = vpop.eup %2185 }
 0x236   : > { %3842 = vst [vmem:[#allocation75_spill] sm:$0xff] %v3267_v34  ;;  %3843 = vst [vmem:[#allocation76_spill] sm:$0xff] %v3272_v26  ;;  %v977_v8 = vand.u32 2147483647, %v3267_v34  ;;  %2203 = vpow2.f32 %v1375_v52  ;;  %v978_v44 = vand.u32 2147483647, %v3272_v26  ;;  %v3278_v29 = vpop.eup %2187 }
 0x237   : > { %v1024_v51 = vadd.f32 1.0, %v1000_v25  ;;  %v1336_v2 = vmul.f32 %v1312_v19, %v976_v41  ;;  %2205 = vpow2.f32 %v1377_v62  ;;  %v1379_v46 = vmul.f32 1.442695, %v1335_v27 }
 0x238   : > { %v1001_v13 = vmul.f32 0.3275911, %v977_v8  ;;  %v1313_v6 = vsub.f32 0.0, %v977_v8  ;;  %v3280_v63 = vpop.eup %2189  ;;  %2207 = vrcp.f32 %v1023_v55  ;;  %v1002_v39 = vmul.f32 0.3275911, %v978_v44 }
 0x239   : > { %v1381_v37 = vmul.f32 1.442695, %v1336_v2  ;;  %v1314_v31 = vsub.f32 0.0, %v978_v44  ;;  %v3282_v54 = vpop.eup %2191  ;;  %2209 = vrcp.f32 %v1024_v51  ;;  %v1076_v41 = vmul.f32 1.0614054, %v3085_v33 }
 0x23a   : > { %v1025_v52 = vadd.f32 1.0, %v1001_v13  ;;  %v1337_v25 = vmul.f32 %v1313_v6, %v977_v8  ;;  %v3285_v19 = vpop.eup %2193  ;;  %2211 = vpow2.f32 %v1379_v46  ;;  %v1026_v62 = vadd.f32 1.0, %v1002_v39 }
 0x23b   : > { %v1338_v27 = vmul.f32 %v1314_v31, %v978_v44  ;;  %v1075_v34 = vmul.f32 1.0614054, %v3080_v15  ;;  %v3288_v26 = vpop.eup %2195  ;;  %v3291_v2 = vmul.f32 0.5, %v3204_v61  ;;  %2213 = vpow2.f32 %v1381_v37 }
 0x23c   : > { %3844 = vst [vmem:[#allocation77_spill] sm:$0xff] %v3288_v26  ;;  %v1100_v55 = vadd.f32 -1.4531521, %v1076_v41  ;;  %v1078_v51 = vmul.f32 1.0614054, %v3108_v14  ;;  %2215 = vrcp.f32 %v1025_v52  ;;  %v3297_v46 = vpop.eup %2197  ;;  %vm1437_vm3 = vcmp.lt.f32.partialorder %v3019_v30, 0.0 }
 0x23d   : > { %3845 = vst [vmem:[#allocation78_spill] sm:$0xff] %v3291_v2  ;;  %v3294_v13 = vmul.f32 1.442695, %v1337_v25  ;;  %v1099_v6 = vadd.f32 -1.4531521, %v1075_v34  ;;  %3846 = vst [vmem:[#allocation79_spill] sm:$0xff] %v3297_v46  ;;  %2217 = vrcp.f32 %v1026_v62  ;;  %v3301_v61 = vpop.eup %2199 }
 0x23e   : > { %v1077_v8 = vmul.f32 1.0614054, %v3098_v48  ;;  %v1124_v44 = vmul.f32 %v3085_v33, %v1100_v55  ;;  %v1102_v39 = vadd.f32 -1.4531521, %v1078_v51  ;;  %v1080_v31 = vmul.f32 1.0614054, %v3143_v43  ;;  %v3307_v34 = vpop.eup %2201 }
 0x23f   : > { %3847 = vst [vmem:[#allocation80_spill] sm:$0xff] %v3301_v61  ;;  %v3303_v37 = vmul.f32 1.442695, %v1338_v27  ;;  %v1123_v41 = vmul.f32 %v3080_v15, %v1099_v6  ;;  %v1079_v25 = vmul.f32 1.0614054, %v3135_v18  ;;  %3849 = vst [vmem:[#allocation82_spill] sm:$0xff] %v3307_v34  ;;  %2219 = vpow2.f32 %v3294_v13 }
 0x240   : > { %v1101_v52 = vadd.f32 -1.4531521, %v1077_v8  ;;  %v1148_v2 = vadd.f32 1.4214138, %v1124_v44  ;;  %v1126_v50 = vmul.f32 %v3108_v14, %v1102_v39  ;;  %v1104_v62 = vadd.f32 -1.4531521, %v1080_v31  ;;  %v3311_v51 = vpop.eup %2203 }
 0x241   : > { %3848 = vst [vmem:[#allocation81_spill] sm:$0xff] %v3303_v37  ;;  %v1082_v55 = vmul.f32 1.0614054, %v3165_v56  ;;  %3850 = vst [vmem:[#allocation83_spill] sm:$0xff] %v3311_v51  ;;  %v1147_v4 = vadd.f32 1.4214138, %v1123_v41  ;;  %v3315_v6 = vpop.eup %2205 }
 0x242   : > { %v1125_v26 = vmul.f32 %v3098_v48, %v1101_v52  ;;  %v1103_v27 = vadd.f32 -1.4531521, %v1079_v25  ;;  %v1081_v46 = vmul.f32 1.0614054, %v3157_v24  ;;  %3851 = vst [vmem:[#allocation84_spill] sm:$0xff] %v3315_v6  ;;  %v1172_v8 = vmul.f32 %v3085_v33, %v1148_v2  ;;  %v3319_v39 = vpop.eup %2207 }
 0x243   : > { %v1150_v9 = vadd.f32 1.4214138, %v1126_v50  ;;  %v1128_v44 = vmul.f32 %v3143_v43, %v1104_v62  ;;  %v1106_v37 = vadd.f32 -1.4531521, %v1082_v55  ;;  %3852 = vst [vmem:[#allocation85_spill] sm:$0xff] %v3319_v39  ;;  %v1171_v31 = vmul.f32 %v3080_v15, %v1147_v4  ;;  %v3323_v52 = vpop.eup %2209 }
 0x244   : > { %v1149_v61 = vadd.f32 1.4214138, %v1125_v26  ;;  %v1127_v41 = vmul.f32 %v3135_v18, %v1103_v27  ;;  %v1105_v51 = vadd.f32 -1.4531521, %v1081_v46  ;;  %3853 = vst [vmem:[#allocation86_spill] sm:$0xff] %v3323_v52  ;;  %v3327_v50 = vpop.eup %2211  ;;  %vm1440_vm4 = vcmp.lt.f32.partialorder %v3032_v60, 0.0 }
 0x245   : > { %v1196_v25 = vadd.f32 -0.28449672, %v1172_v8  ;;  %v1174_v34 = vmul.f32 %v3108_v14, %v1150_v9  ;;  %v1152_v6 = vadd.f32 1.4214138, %v1128_v44  ;;  %v1130_v2 = vmul.f32 %v3165_v56, %v1106_v37  ;;  %3854 = vst [vmem:[#allocation87_spill] sm:$0xff] %v3327_v50  ;;  %v3331_v26 = vpop.eup %2213 }
 0x246   : > { %v1195_v62 = vadd.f32 -0.28449672, %v1171_v31  ;;  %v1173_v55 = vmul.f32 %v3098_v48, %v1149_v61  ;;  %v1151_v39 = vadd.f32 1.4214138, %v1127_v41  ;;  %v1129_v4 = vmul.f32 %v3157_v24, %v1105_v51  ;;  %3855 = vst [vmem:[#allocation88_spill] sm:$0xff] %v3331_v26  ;;  %v3335_v9 = vpop.eup %2215 }
 0x247   : > { %v1220_v46 = vmul.f32 %v3085_v33, %v1196_v25  ;;  %v1198_v27 = vadd.f32 -0.28449672, %v1174_v34  ;;  %v1176_v8 = vmul.f32 %v3143_v43, %v1152_v6  ;;  %v1154_v52 = vadd.f32 1.4214138, %v1130_v2  ;;  %v3339_v61 = vpop.eup %2217 }
 0x248   : > { %v1219_v37 = vmul.f32 %v3080_v15, %v1195_v62  ;;  %v1197_v44 = vadd.f32 -0.28449672, %v1173_v55  ;;  %v1175_v31 = vmul.f32 %v3135_v18, %v1151_v39  ;;  %v1153_v50 = vadd.f32 1.4214138, %v1129_v4 }
 0x249   : > { %v1244_v41 = vadd.f32 0.2548296, %v1220_v46  ;;  %v1222_v51 = vmul.f32 %v3108_v14, %v1198_v27  ;;  %v1200_v26 = vadd.f32 -0.28449672, %v1176_v8  ;;  %v1178_v25 = vmul.f32 %v3165_v56, %v1154_v52 }
 0x24a   : > { %v1243_v34 = vadd.f32 0.2548296, %v1219_v37  ;;  %v1221_v6 = vmul.f32 %v3098_v48, %v1197_v44  ;;  %v1199_v2 = vadd.f32 -0.28449672, %v1175_v31  ;;  %v1177_v62 = vmul.f32 %v3157_v24, %v1153_v50 }
 0x24b   : > { %v1268_v39 = vmul.f32 %v3085_v33, %v1244_v41  ;;  %v1246_v55 = vadd.f32 0.2548296, %v1222_v51  ;;  %v1224_v4 = vmul.f32 %v3143_v43, %v1200_v26  ;;  %v1202_v46 = vadd.f32 -0.28449672, %v1178_v25 }
 0x24c   : > { %v1267_v52 = vmul.f32 %v3080_v15, %v1243_v34  ;;  %v1245_v27 = vadd.f32 0.2548296, %v1221_v6  ;;  %v1223_v8 = vmul.f32 %v3135_v18, %v1199_v2  ;;  %v1201_v37 = vadd.f32 -0.28449672, %v1177_v62 }
 0x24d   : > { %v1388_v50 = vmul.f32 %v3093_v0, %v1268_v39  ;;  %v1270_v44 = vmul.f32 %v3108_v14, %v1246_v55  ;;  %v1248_v31 = vadd.f32 0.2548296, %v1224_v4  ;;  %v1226_v33 = vmul.f32 %v3165_v56, %v1202_v46 }
 0x24e   : > { %v1387_v26 = vmul.f32 %v3090_v22, %v1267_v52  ;;  %v1269_v41 = vmul.f32 %v3098_v48, %v1245_v27  ;;  %v1247_v15 = vadd.f32 0.2548296, %v1223_v8  ;;  %v1225_v51 = vmul.f32 %v3157_v24, %v1201_v37 }
 0x24f   : > { %vm1439_vm5 = vcmp.lt.f32.partialorder %v3029_v20, 0.0  ;;  %v1412_v25 = vsub.f32 1.0, %v1388_v50  ;;  %v1390_v34 = vmul.f32 %v3131_v21, %v1270_v44  ;;  %v1272_v0 = vmul.f32 %v3143_v43, %v1248_v31  ;;  %v3858_v20 = vld [vmem:[#allocation38_spill] sm:$0xff] }
 0x250   : > { %v1250_v14 = vadd.f32 0.2548296, %v1226_v33  ;;  %vm1442_vm6 = vcmp.lt.f32.partialorder %v3048_v28, 0.0  ;;  %v1411_v6 = vsub.f32 1.0, %v1387_v26  ;;  %v1389_v2 = vmul.f32 %v3114_v47, %v1269_v41 }
 0x251   : > { %v1271_v22 = vmul.f32 %v3135_v18, %v1247_v15  ;;  %v1249_v62 = vadd.f32 0.2548296, %v1225_v51  ;;  %v1460_v48 = vsub.f32 0.0, %v1412_v25  ;;  %v1414_v39 = vsub.f32 1.0, %v1390_v34 }
 0x252   : > { %v1392_v55 = vmul.f32 %v3152_v38, %v1272_v0  ;;  %v1274_v4 = vmul.f32 %v3165_v56, %v1250_v14  ;;  %v1459_v46 = vsub.f32 0.0, %v1411_v6  ;;  %v1413_v52 = vsub.f32 1.0, %v1389_v2  ;;  %v3856_v14 = vld [vmem:[#allocation43_spill] sm:$0xff] }
 0x253   : > { %v1391_v21 = vmul.f32 %v3147_v49, %v1271_v22  ;;  %v1273_v43 = vmul.f32 %v3157_v24, %v1249_v62  ;;  %v1484_v27 = vsel %vm1436_vm0, %v1460_v48, %v1412_v25  ;;  %v1462_v8 = vsub.f32 0.0, %v1414_v39  ;;  %v3857_v22 = vld [vmem:[#allocation55_spill] sm:$0xff] }
 0x254   : > { %v1416_v47 = vsub.f32 1.0, %v1392_v55  ;;  %v1394_v18 = vmul.f32 %v3179_v12, %v1274_v4  ;;  %v1532_v37 = vadd.f32 1.0, %v1484_v27  ;;  %v1483_v50 = vsel %vm1435_vm1, %v1459_v46, %v1411_v6  ;;  %v3859_v55 = vld [vmem:[#allocation64_spill] sm:$0xff]  ;;  %v3860_v4 = vld [vmem:[#allocation45_spill] sm:$0xff] }
 0x255   : > { %v1461_v38 = vsub.f32 0.0, %v1413_v52  ;;  %v1415_v44 = vsub.f32 1.0, %v1391_v21  ;;  %vm1441_vm7 = vcmp.lt.f32.partialorder %v3043_v32, 0.0  ;;  %v1531_v56 = vadd.f32 1.0, %v1483_v50 }
 0x256   : > { %v1486_v49 = vsel %vm1438_vm2, %v1462_v8, %v1414_v39  ;;  %v1464_v24 = vsub.f32 0.0, %v1416_v47  ;;  %v1418_v31 = vsub.f32 1.0, %v1394_v18  ;;  %v1556_v35 = vmul.f32 %v1532_v37, %v3052_v42 }
 0x257   : > { %v1534_v33 = vadd.f32 1.0, %v1486_v49  ;;  %v1485_v12 = vsel %vm1437_vm3, %v1461_v38, %v1413_v52  ;;  %v1463_v26 = vsub.f32 0.0, %v1415_v44  ;;  %v1555_v16 = vmul.f32 %v1531_v56, %v3045_v1 }
 0x258   : > { %v1533_v41 = vadd.f32 1.0, %v1485_v12  ;;  %v1488_v15 = vsel %vm1440_vm4, %v1464_v24, %v1416_v47  ;;  %v1466_v51 = vsub.f32 0.0, %v1418_v31  ;;  %1654 = vmatprep.mubr.f32.mxu1 %v1556_v35  ;;  %v1393_v42 = vmul.f32 %v3172_v3, %v1273_v43 }
 0x259   : > { %v1558_v40 = vmul.f32 %v1534_v33, %v3056_v10  ;;  %v1536_v25 = vadd.f32 1.0, %v1488_v15  ;;  %v1487_v34 = vsel %vm1439_vm5, %v1463_v26, %v1415_v44  ;;  %1655 = vmatmul.mubr.f32.vlgmr.msra.gmra.mrb[0].mxu1 %v1555_v16  ;;  %v1084_v60 = vmul.f32 1.0614054, %v3199_v11  ;;  %v3861_v26 = vld [vmem:[#allocation44_spill] sm:$0xff] }
 0x25a   : > { %v1557_v30 = vmul.f32 %v1533_v41, %v3050_v57  ;;  %v1535_v0 = vadd.f32 1.0, %v1487_v34  ;;  %v1490_v1 = vsel %vm1442_vm6, %v1466_v51, %v1418_v31  ;;  %v1417_v10 = vsub.f32 1.0, %v1393_v42 }
 0x25b   : > { %1660 = vmatprep.mubr.f32.mxu1 %v1558_v40  ;;  %v1560_v6 = vmul.f32 %v1536_v25, %v3856_v14  ;;  %v1538_v2 = vadd.f32 1.0, %v1490_v1  ;;  %v1083_v62 = vmul.f32 1.0614054, %v3857_v22  ;;  %v1108_v39 = vadd.f32 -1.4531521, %v1084_v60 }
 0x25c   : > { %v1559_v48 = vmul.f32 %v1535_v0, %v3858_v20  ;;  %v1086_v3 = vmul.f32 1.0614054, %v3218_v45  ;;  %v1085_v57 = vmul.f32 1.0614054, %v3859_v55  ;;  %v1465_v28 = vsub.f32 0.0, %v1417_v10 }
 0x25d   : > { %v1562_v46 = vmul.f32 %v1538_v2, %v3860_v4  ;;  %v1107_v52 = vadd.f32 -1.4531521, %v1083_v62  ;;  %v1088_v21 = vmul.f32 1.0614054, %v3236_v59  ;;  %1661 = vmatmul.mubr.f32.gmra.mrb[2].mxu1 %v1557_v30  ;;  %v1132_v43 = vmul.f32 %v3199_v11, %v1108_v39 }
 0x25e   : > { %v1110_v27 = vadd.f32 -1.4531521, %v1086_v3  ;;  %v1109_v8 = vadd.f32 -1.4531521, %v1085_v57  ;;  %v1087_v47 = vmul.f32 1.0614054, %v3230_v17  ;;  %1666 = vmatprep.mubr.f32.mxu1 %v1560_v6  ;;  %v1489_v18 = vsel %vm1441_vm7, %v1465_v28, %v1417_v10 }
 0x25f   : > { %v1131_v37 = vmul.f32 %v3857_v22, %v1107_v52  ;;  %v1112_v50 = vadd.f32 -1.4531521, %v1088_v21  ;;  %v1090_v38 = vmul.f32 1.0614054, %v3275_v5  ;;  %v1537_v44 = vadd.f32 1.0, %v1489_v18 }
 0x260   : > { %v1156_v56 = vadd.f32 1.4214138, %v1132_v43  ;;  %v1134_v49 = vmul.f32 %v3218_v45, %v1110_v27  ;;  %v1133_v24 = vmul.f32 %v3859_v55, %v1109_v8  ;;  %v1111_v33 = vadd.f32 -1.4531521, %v1087_v47  ;;  %v3862_v43 = vld [vmem:[#allocation40_spill] sm:$0xff] }
 0x261   : > { %v1155_v31 = vadd.f32 1.4214138, %v1131_v37  ;;  %v1136_v35 = vmul.f32 %v3236_v59, %v1112_v50  ;;  %v1114_v12 = vadd.f32 -1.4531521, %v1090_v38  ;;  %1667 = vmatmul.mubr.f32.gmra.mrb[4].mxu1 %v1559_v48  ;;  %v1561_v32 = vmul.f32 %v1537_v44, %v3861_v26  ;;  %v3863_v37 = vld [vmem:[#allocation39_spill] sm:$0xff]  ;;  %v3866_v26 = vld [vmem:[#allocation48_spill] sm:$0xff] }
 0x262   : > { %v1180_v16 = vmul.f32 %v3199_v11, %v1156_v56  ;;  %v1158_v41 = vadd.f32 1.4214138, %v1134_v49  ;;  %v1157_v15 = vadd.f32 1.4214138, %v1133_v24  ;;  %1672 = vmatprep.mubr.f32.mxu1 %v1562_v46  ;;  %v1135_v25 = vmul.f32 %v3230_v17, %v1111_v33  ;;  %v3864_v49 = vld [vmem:[#allocation41_spill] sm:$0xff]  ;;  %v3865_v24 = vld [vmem:[#allocation42_spill] sm:$0xff] }
 0x263   : > { %v1179_v51 = vmul.f32 %v3857_v22, %v1155_v31  ;;  %v1160_v40 = vadd.f32 1.4214138, %v1136_v35  ;;  %v1138_v34 = vmul.f32 %v3275_v5, %v1114_v12  ;;  %v1089_v1 = vmul.f32 1.0614054, %v3269_v23 }
 0x264   : > { %v1204_v42 = vadd.f32 -0.28449672, %v1180_v16  ;;  %v1182_v30 = vmul.f32 %v3218_v45, %v1158_v41  ;;  %v1181_v0 = vmul.f32 %v3859_v55, %v1157_v15  ;;  %v1159_v6 = vadd.f32 1.4214138, %v1135_v25 }
 0x265   : > { %v1203_v60 = vadd.f32 -0.28449672, %v1179_v51  ;;  %v1184_v14 = vmul.f32 %v3236_v59, %v1160_v40  ;;  %v1162_v2 = vadd.f32 1.4214138, %v1138_v34  ;;  %1673 = vmatmul.mubr.f32.gmra.mrb[6].mxu1 %v1561_v32  ;;  %v1113_v48 = vadd.f32 -1.4531521, %v1089_v1 }
 0x266   : > { %v1228_v10 = vmul.f32 %v3199_v11, %v1204_v42  ;;  %v1206_v62 = vadd.f32 -0.28449672, %v1182_v30  ;;  %v1205_v20 = vadd.f32 -0.28449672, %v1181_v0  ;;  %v1183_v57 = vmul.f32 %v3230_v17, %v1159_v6  ;;  %v3867_v32 = vld [vmem:[#allocation62_spill] sm:$0xff]  ;;  %v3868_v51 = vld [vmem:[#allocation60_spill] sm:$0xff] }
 0x267   : > { %v1227_v39 = vmul.f32 %v3857_v22, %v1203_v60  ;;  %v1208_v3 = vadd.f32 -0.28449672, %v1184_v14  ;;  %v1186_v4 = vmul.f32 %v3275_v5, %v1162_v2  ;;  %v1137_v21 = vmul.f32 %v3269_v23, %v1113_v48  ;;  %v3869_v60 = vld [vmem:[#allocation47_spill] sm:$0xff]  ;;  %v3870_v14 = vld [vmem:[#allocation50_spill] sm:$0xff] }
 0x268   : > { %v1252_v46 = vadd.f32 0.2548296, %v1228_v10  ;;  %v1230_v28 = vmul.f32 %v3218_v45, %v1206_v62  ;;  %v1229_v52 = vmul.f32 %v3859_v55, %v1205_v20  ;;  %vm1444_vm8 = vcmp.lt.f32.partialorder %v3862_v43, 0.0 }
 0x269   : > { %v1251_v27 = vadd.f32 0.2548296, %v1227_v39  ;;  %v1232_v8 = vmul.f32 %v3236_v59, %v1208_v3  ;;  %v1207_v47 = vadd.f32 -0.28449672, %v1183_v57  ;;  %v1210_v18 = vadd.f32 -0.28449672, %v1186_v4 }
 0x26a   : > { %vm1443_vm9 = vcmp.lt.f32.partialorder %v3863_v37, 0.0  ;;  %v1276_v50 = vmul.f32 %v3199_v11, %v1252_v46  ;;  %v1254_v38 = vadd.f32 0.2548296, %v1230_v28  ;;  %v1253_v44 = vadd.f32 0.2548296, %v1229_v52  ;;  %v3873_v37 = vld [vmem:[#allocation46_spill] sm:$0xff] }
 0x26b   : > { %v1161_v56 = vadd.f32 1.4214138, %v1137_v21  ;;  %vm1445_vm10 = vcmp.lt.f32.partialorder %v3864_v49, 0.0  ;;  %vm1446_vm11 = vcmp.lt.f32.partialorder %v3865_v24, 0.0  ;;  %v1275_v31 = vmul.f32 %v3857_v22, %v1251_v27  ;;  %v3871_v27 = vld [vmem:[#allocation51_spill] sm:$0xff]  ;;  %v3874_v49 = vld [vmem:[#allocation53_spill] sm:$0xff] }
 0x26c   : > { %v1256_v35 = vadd.f32 0.2548296, %v1232_v8  ;;  %v1231_v33 = vmul.f32 %v3230_v17, %v1207_v47  ;;  %v1234_v12 = vmul.f32 %v3275_v5, %v1210_v18  ;;  %vm1448_vm12 = vcmp.lt.f32.partialorder %v3866_v26, 0.0 }
 0x26d   : > { %v1396_v16 = vmul.f32 %v3867_v32, %v1276_v50  ;;  %v1278_v11 = vmul.f32 %v3218_v45, %v1254_v38  ;;  %v1277_v41 = vmul.f32 %v3859_v55, %v1253_v44  ;;  %v1185_v15 = vmul.f32 %v3269_v23, %v1161_v56  ;;  %v3872_v50 = vld [vmem:[#allocation49_spill] sm:$0xff] }
 0x26e   : > { %v1395_v40 = vmul.f32 %v3868_v51, %v1275_v31  ;;  %v1280_v25 = vmul.f32 %v3236_v59, %v1256_v35  ;;  %v1255_v22 = vadd.f32 0.2548296, %v1231_v33  ;;  %v1258_v34 = vadd.f32 0.2548296, %v1234_v12  ;;  %v3875_v12 = vld [vmem:[#allocation56_spill] sm:$0xff] }
 0x26f   : > { %v1420_v42 = vsub.f32 1.0, %v1396_v16  ;;  %v1398_v30 = vmul.f32 %v3228_v36, %v1278_v11  ;;  %v1397_v0 = vmul.f32 %v3224_v58, %v1277_v41  ;;  %v1209_v1 = vadd.f32 -0.28449672, %v1185_v15 }
 0x270   : > { %vm1447_vm13 = vcmp.lt.f32.partialorder %v3869_v60, 0.0  ;;  %vm1450_vm14 = vcmp.lt.f32.partialorder %v3870_v14, 0.0  ;;  %v1419_v45 = vsub.f32 1.0, %v1395_v40  ;;  %v1400_v55 = vmul.f32 %v3264_v7, %v1280_v25 }
 0x271   : > { %v1279_v6 = vmul.f32 %v3230_v17, %v1255_v22  ;;  %v1282_v2 = vmul.f32 %v3275_v5, %v1258_v34  ;;  %v1468_v59 = vsub.f32 0.0, %v1420_v42  ;;  %v1422_v10 = vsub.f32 1.0, %v1398_v30  ;;  %v3877_v22 = vld [vmem:[#allocation82_spill] sm:$0xff] }
 0x272   : > { %v1421_v62 = vsub.f32 1.0, %v1397_v0  ;;  %v1233_v20 = vmul.f32 %v3269_v23, %v1209_v1  ;;  %v1467_v36 = vsub.f32 0.0, %v1419_v45  ;;  %v1424_v48 = vsub.f32 1.0, %v1400_v55  ;;  %v3879_v0 = vld [vmem:[#allocation81_spill] sm:$0xff]  ;;  %v3880_v1 = vld [vmem:[#allocation54_spill] sm:$0xff] }
 0x273   : > { %v1399_v58 = vmul.f32 %v3252_v53, %v1279_v6  ;;  %v1402_v39 = vmul.f32 %v3280_v63, %v1282_v2  ;;  %v1492_v3 = vsel %vm1444_vm8, %v1468_v59, %v1420_v42  ;;  %v1470_v57 = vsub.f32 0.0, %v1422_v10  ;;  %v3878_v42 = vld [vmem:[#allocation80_spill] sm:$0xff]  ;;  %v3881_v2 = vld [vmem:[#allocation86_spill] sm:$0xff] }
 0x274   : > { %v1469_v7 = vsub.f32 0.0, %v1421_v62  ;;  %v1257_v4 = vadd.f32 0.2548296, %v1233_v20  ;;  %v1540_v17 = vadd.f32 1.0, %v1492_v3  ;;  %v1491_v5 = vsel %vm1443_vm9, %v1467_v36, %v1419_v45 }
 0x275   : > { %v1472_v46 = vsub.f32 0.0, %v1424_v48  ;;  %v1423_v28 = vsub.f32 1.0, %v1399_v58  ;;  %v1539_v52 = vadd.f32 1.0, %v1491_v5  ;;  %v1494_v21 = vsel %vm1446_vm11, %v1470_v57, %v1422_v10  ;;  %v3882_v10 = vld [vmem:[#allocation65_spill] sm:$0xff] }
 0x276   : > { %v1493_v53 = vsel %vm1445_vm10, %v1469_v7, %v1421_v62  ;;  %v1426_v63 = vsub.f32 1.0, %v1402_v39  ;;  %v1564_v43 = vmul.f32 %v1540_v17, %v3871_v27  ;;  %v1542_v8 = vadd.f32 1.0, %v1494_v21 }
 0x277   : > { %v1541_v47 = vadd.f32 1.0, %v1493_v53  ;;  %v1496_v18 = vsel %vm1448_vm12, %v1472_v46, %v1424_v48  ;;  %vm1449_vm15 = vcmp.lt.f32.partialorder %v3872_v50, 0.0  ;;  %v1563_v38 = vmul.f32 %v1539_v52, %v3873_v37  ;;  %v3883_v48 = vld [vmem:[#allocation85_spill] sm:$0xff] }
 0x278   : > { %v1544_v44 = vadd.f32 1.0, %v1496_v18  ;;  %v1471_v56 = vsub.f32 0.0, %v1423_v28  ;;  %v1474_v31 = vsub.f32 0.0, %v1426_v63  ;;  %1678 = vmatprep.mubr.f32.mxu1 %v1564_v43  ;;  %v1566_v24 = vmul.f32 %v1542_v8, %v3874_v49  ;;  %v3884_v18 = vld [vmem:[#allocation58_spill] sm:$0xff] }
 0x279   : > { %v1281_v35 = vmul.f32 %v3269_v23, %v1257_v4  ;;  %v1092_v33 = vmul.f32 1.0614054, %v3285_v19  ;;  %1679 = vmatmul.mubr.f32.gmra.mrb[8].mxu1 %v1563_v38  ;;  %v1091_v11 = vmul.f32 1.0614054, %v3282_v54  ;;  %v3876_v23 = vld [vmem:[#allocation52_spill] sm:$0xff]  ;;  %2221 = vpow2.f32 %v3879_v0 }
 0x27a   : > { %v1568_v26 = vmul.f32 %v1544_v44, %v3875_v12  ;;  %v1495_v32 = vsel %vm1447_vm13, %v1471_v56, %v1423_v28  ;;  %v1498_v16 = vsel %vm1450_vm14, %v1474_v31, %v1426_v63  ;;  %1684 = vmatprep.mubr.f32.mxu1 %v1566_v24  ;;  %v1565_v40 = vmul.f32 %v1541_v47, %v3876_v23  ;;  %v3491_v63 = vpop.eup %2219 }
 0x27b   : > { %v1543_v13 = vadd.f32 1.0, %v1495_v32  ;;  %v1546_v41 = vadd.f32 1.0, %v1498_v16  ;;  %v1401_v15 = vmul.f32 %v3278_v29, %v1281_v35  ;;  %v1116_v51 = vadd.f32 -1.4531521, %v1092_v33 }
 0x27c   : > { %v1115_v25 = vadd.f32 -1.4531521, %v1091_v11  ;;  %v1094_v34 = vmul.f32 1.0614054, %v3877_v22  ;;  %v1093_v30 = vmul.f32 1.0614054, %v3878_v42 }
 0x27d   : > { %v1567_v60 = vmul.f32 %v1543_v13, %v3880_v1  ;;  %v1425_v14 = vsub.f32 1.0, %v1401_v15  ;;  %v1140_v45 = vmul.f32 %v3285_v19, %v1116_v51  ;;  %1685 = vmatmul.mubr.f32.gmra.mrb[10].mxu1 %v1565_v40  ;;  %v1096_v59 = vmul.f32 1.0614054, %v3881_v2  ;;  %v3885_v15 = vld [vmem:[#allocation59_spill] sm:$0xff] }
 0x27e   : > { %v1139_v55 = vmul.f32 %v3282_v54, %v1115_v25  ;;  %v1118_v6 = vadd.f32 -1.4531521, %v1094_v34  ;;  %v1117_v29 = vadd.f32 -1.4531521, %v1093_v30  ;;  %1690 = vmatprep.mubr.f32.mxu1 %v1568_v26  ;;  %v1570_v62 = vmul.f32 %v1546_v41, %v3882_v10  ;;  %v3886_v34 = vld [vmem:[#allocation57_spill] sm:$0xff]  ;;  %v3889_v10 = vld [vmem:[#allocation79_spill] sm:$0xff] }
 0x27f   : > { %v1473_v20 = vsub.f32 0.0, %v1425_v14  ;;  %v1164_v36 = vadd.f32 1.4214138, %v1140_v45  ;;  %v1095_v58 = vmul.f32 1.0614054, %v3883_v48  ;;  %vm1452_vm0 = vcmp.lt.f32.partialorder %v3885_v15, 0.0 }
 0x280   : > { %v1163_v39 = vadd.f32 1.4214138, %v1139_v55  ;;  %v1142_v3 = vmul.f32 %v3877_v22, %v1118_v6  ;;  %v1141_v57 = vmul.f32 %v3878_v42, %v1117_v29  ;;  %v1120_v7 = vadd.f32 -1.4531521, %v1096_v59  ;;  %v3887_v29 = vld [vmem:[#allocation61_spill] sm:$0xff]  ;;  %v3888_v59 = vld [vmem:[#allocation63_spill] sm:$0xff] }
 0x281   : > { %v1497_v4 = vsel %vm1449_vm15, %v1473_v20, %v1425_v14  ;;  %v1188_v17 = vmul.f32 %v3285_v19, %v1164_v36  ;;  %v1119_v5 = vadd.f32 -1.4531521, %v1095_v58  ;;  %v1098_v46 = vmul.f32 1.0614054, %v3339_v61  ;;  %1691 = vmatmul.mubr.f32.gmra.mrb[12].mxu1 %v1567_v60  ;;  %v3890_v58 = vld [vmem:[#allocation77_spill] sm:$0xff] }
 0x282   : > { %v1545_v28 = vadd.f32 1.0, %v1497_v4  ;;  %v1187_v52 = vmul.f32 %v3282_v54, %v1163_v39  ;;  %v1166_v21 = vadd.f32 1.4214138, %v1142_v3  ;;  %v1165_v53 = vadd.f32 1.4214138, %v1141_v57  ;;  %1696 = vmatprep.mubr.f32.mxu1 %v1570_v62 }
 0x283   : > { %v1212_v27 = vadd.f32 -0.28449672, %v1188_v17  ;;  %v1144_v43 = vmul.f32 %v3881_v2, %v1120_v7  ;;  %v1143_v8 = vmul.f32 %v3883_v48, %v1119_v5  ;;  %v1122_v47 = vadd.f32 -1.4531521, %v1098_v46  ;;  %v2222_v32 = vpop.eup %2221 }
 0x284   : > { %v1569_v50 = vmul.f32 %v1545_v28, %v3884_v18  ;;  %v1211_v37 = vadd.f32 -0.28449672, %v1187_v52  ;;  %v1190_v38 = vmul.f32 %v3877_v22, %v1166_v21  ;;  %v1189_v44 = vmul.f32 %v3878_v42, %v1165_v53  ;;  %v3891_v28 = vld [vmem:[#allocation84_spill] sm:$0xff]  ;;  %v3892_v21 = vld [vmem:[#allocation83_spill] sm:$0xff] }
 0x285   : > { %v1236_v56 = vmul.f32 %v3285_v19, %v1212_v27  ;;  %v1168_v31 = vadd.f32 1.4214138, %v1144_v43  ;;  %v1167_v49 = vadd.f32 1.4214138, %v1143_v8  ;;  %v1146_v24 = vmul.f32 %v3339_v61, %v1122_v47 }
 0x286   : > { %1697 = vmatmul.mubr.f32.gmra.mrb[14].mxu1 %v1569_v50  ;;  %v1235_v35 = vmul.f32 %v3282_v54, %v1211_v37  ;;  %v1214_v33 = vadd.f32 -0.28449672, %v1190_v38  ;;  %v1213_v12 = vadd.f32 -0.28449672, %v1189_v44  ;;  %v1097_v26 = vmul.f32 1.0614054, %v3335_v9 }
 0x287   : > { %v1260_v16 = vadd.f32 0.2548296, %v1236_v56  ;;  %v1192_v11 = vmul.f32 %v3881_v2, %v1168_v31  ;;  %v1191_v13 = vmul.f32 %v3883_v48, %v1167_v49  ;;  %v1170_v41 = vadd.f32 1.4214138, %v1146_v24  ;;  %v3893_v44 = vld [vmem:[#allocation88_spill] sm:$0xff]  ;;  %v3894_v31 = vld [vmem:[#allocation87_spill] sm:$0xff] }
 0x288   : > { %v1259_v51 = vadd.f32 0.2548296, %v1235_v35  ;;  %v1238_v23 = vmul.f32 %v3877_v22, %v1214_v33  ;;  %v1237_v40 = vmul.f32 %v3878_v42, %v1213_v12  ;;  %v1121_v25 = vadd.f32 -1.4531521, %v1097_v26 }
 0x289   : > { %vm1451_vm1 = vcmp.lt.f32.partialorder %v3886_v34, 0.0  ;;  %v1284_v30 = vmul.f32 %v3285_v19, %v1260_v16  ;;  %v1216_v0 = vadd.f32 -0.28449672, %v1192_v11  ;;  %v1215_v1 = vadd.f32 -0.28449672, %v1191_v13  ;;  %v3895_v13 = vld [vmem:[#allocation69_spill] sm:$0xff] }
 0x28a   : > { %v1194_v60 = vmul.f32 %v3339_v61, %v1170_v41  ;;  %v1283_v14 = vmul.f32 %v3282_v54, %v1259_v51  ;;  %v1262_v45 = vadd.f32 0.2548296, %v1238_v23  ;;  %v1261_v55 = vadd.f32 0.2548296, %v1237_v40  ;;  %v3896_v23 = vld [vmem:[#allocation66_spill] sm:$0xff] }
 0x28b   : > { %v1145_v6 = vmul.f32 %v3335_v9, %v1121_v25  ;;  %vm1453_vm2 = vcmp.lt.f32.partialorder %v3887_v29, 0.0  ;;  %vm1454_vm3 = vcmp.lt.f32.partialorder %v3888_v59, 0.0  ;;  %v1404_v62 = vmul.f32 %v3889_v10, %v1284_v30 }
 0x28c   : > { %v1240_v20 = vmul.f32 %v3881_v2, %v1216_v0  ;;  %v1239_v19 = vmul.f32 %v3883_v48, %v1215_v1  ;;  %v1218_v36 = vadd.f32 -0.28449672, %v1194_v60  ;;  %v1403_v39 = vmul.f32 %v3890_v58, %v1283_v14  ;;  %v3897_v0 = vld [vmem:[#allocation72_spill] sm:$0xff]  ;;  %v3898_v14 = vld [vmem:[#allocation70_spill] sm:$0xff]  ;;  %v3902_v58 = vld [vmem:[#allocation71_spill] sm:$0xff] }
 0x28d   : > { %v1286_v3 = vmul.f32 %v3877_v22, %v1262_v45  ;;  %v1285_v54 = vmul.f32 %v3878_v42, %v1261_v55  ;;  %v1169_v57 = vadd.f32 1.4214138, %v1145_v6  ;;  %v1428_v7 = vsub.f32 1.0, %v1404_v62  ;;  %v3899_v45 = vld [vmem:[#allocation68_spill] sm:$0xff]  ;;  %v3900_v6 = vld [vmem:[#allocation78_spill] sm:$0xff] }
 0x28e   : > { %v1264_v4 = vadd.f32 0.2548296, %v1240_v20  ;;  %v1263_v17 = vadd.f32 0.2548296, %v1239_v19  ;;  %v1242_v5 = vmul.f32 %v3339_v61, %v1218_v36  ;;  %v1427_v46 = vsub.f32 1.0, %v1403_v39  ;;  %v3901_v36 = vld [vmem:[#allocation76_spill] sm:$0xff] }
 0x28f   : > { %v1406_v52 = vmul.f32 %v3891_v28, %v1286_v3  ;;  %v1405_v53 = vmul.f32 %v3892_v21, %v1285_v54  ;;  %v1193_v27 = vmul.f32 %v3335_v9, %v1169_v57  ;;  %v1476_v43 = vsub.f32 0.0, %v1428_v7 }
 0x290   : > { %v1288_v8 = vmul.f32 %v3881_v2, %v1264_v4  ;;  %v1287_v22 = vmul.f32 %v3883_v48, %v1263_v17  ;;  %v1266_v47 = vadd.f32 0.2548296, %v1242_v5  ;;  %v1475_v42 = vsub.f32 0.0, %v1427_v46  ;;  %v3903_v4 = vld [vmem:[#allocation67_spill] sm:$0xff]  ;;  %v3904_v5 = vld [vmem:[#allocation74_spill] sm:$0xff] }
 0x291   : > { %v1430_v18 = vsub.f32 1.0, %v1406_v52  ;;  %v1429_v50 = vsub.f32 1.0, %v1405_v53  ;;  %v1217_v37 = vadd.f32 -0.28449672, %v1193_v27  ;;  %v1500_v38 = vsel %vm1452_vm0, %v1476_v43, %v1428_v7  ;;  %v3905_v27 = vld [vmem:[#allocation75_spill] sm:$0xff] }
 0x292   : > { %v1408_v56 = vmul.f32 %v3893_v44, %v1288_v8  ;;  %v1407_v49 = vmul.f32 %v3894_v31, %v1287_v22  ;;  %v1290_v24 = vmul.f32 %v3339_v61, %v1266_v47  ;;  %v1548_v35 = vadd.f32 1.0, %v1500_v38  ;;  %v3906_v8 = vld [vmem:[#allocation73_spill] sm:$0xff] }
 0x293   : > { %v1499_v2 = vsel %vm1451_vm1, %v1475_v42, %v1427_v46  ;;  %v1478_v33 = vsub.f32 0.0, %v1430_v18  ;;  %v1477_v48 = vsub.f32 0.0, %v1429_v50  ;;  %v1241_v61 = vmul.f32 %v3335_v9, %v1217_v37  ;;  %v332_v42 = vld [vmem:[%s3693_s6] sm:$0x3]  ;;  %v3908_v37 = vld [vmem:[#allocation13_spill] sm:$0xff] }
 0x294   : > { %v1547_v12 = vadd.f32 1.0, %v1499_v2  ;;  %v1432_v26 = vsub.f32 1.0, %v1408_v56  ;;  %v1431_v16 = vsub.f32 1.0, %v1407_v49  ;;  %v1410_v11 = vmul.f32 %v2222_v32, %v1290_v24  ;;  %v3909_v24 = vld [vmem:[#allocation15_spill] sm:$0xff]  ;;  %v3910_v2 = vld [vmem:[#allocation14_spill] sm:$0xff] }
 0x295   : > { %v1572_v41 = vmul.f32 %v1548_v35, %v3895_v13  ;;  %v1502_v15 = vsel %vm1454_vm3, %v1478_v33, %v1430_v18  ;;  %v1501_v51 = vsel %vm1453_vm2, %v1477_v48, %v1429_v50  ;;  %vm1456_vm4 = vcmp.lt.f32.partialorder %v3897_v0, 0.0  ;;  %v3907_v18 = vld [vmem:[#allocation12_spill] sm:$0xff] }
 0x296   : > { %v1571_v40 = vmul.f32 %v1547_v12, %v3896_v23  ;;  %v1550_v25 = vadd.f32 1.0, %v1502_v15  ;;  %v1549_v34 = vadd.f32 1.0, %v1501_v51  ;;  %v1480_v30 = vsub.f32 0.0, %v1432_v26 }
 0x297   : > { %1702 = vmatprep.mubr.f32.mxu1 %v1572_v41  ;;  %v1479_v1 = vsub.f32 0.0, %v1431_v16  ;;  %v1434_v32 = vsub.f32 1.0, %v1410_v11  ;;  %v1265_v60 = vadd.f32 0.2548296, %v1241_v61  ;;  %vm1455_vm5 = vcmp.lt.f32.partialorder %v3898_v14, 0.0  ;;  %v3911_v11 = vld [vmem:[#allocation17_spill] sm:$0xff] }
 0x298   : > { %v1528_v55 = vmul.f32 0.5, %v3899_v45  ;;  %1703 = vmatmul.mubr.f32.gmra.mrb[16].mxu1 %v1571_v40  ;;  %v1574_v29 = vmul.f32 %v1550_v25, %v3900_v6  ;;  %v1504_v59 = vsel %vm1456_vm4, %v1480_v30, %v1432_v26  ;;  %vm1458_vm6 = vcmp.lt.f32.partialorder %v3901_v36, 0.0  ;;  %v3912_v41 = vld [vmem:[#allocation16_spill] sm:$0xff]  ;;  %v3913_v25 = vld [vmem:[#allocation19_spill] sm:$0xff]  ;;  %v3914_v30 = vld [vmem:[#allocation18_spill] sm:$0xff] }
 0x299   : > { %v1552_v10 = vadd.f32 1.0, %v1504_v59  ;;  %v1503_v62 = vsel %vm1455_vm5, %v1479_v1, %v1431_v16  ;;  %v1482_v20 = vsub.f32 0.0, %v1434_v32  ;;  %v1289_v19 = vmul.f32 %v3335_v9, %v1265_v60  ;;  %v3915_v45 = vld [vmem:[#allocation21_spill] sm:$0xff]  ;;  %v3916_v6 = vld [vmem:[#allocation20_spill] sm:$0xff] }
 0x29a   : > { %1708 = vmatprep.mubr.f32.mxu1 %v1574_v29  ;;  %v1573_v39 = vmul.f32 %v1549_v34, %v3902_v58  ;;  %v1551_v3 = vadd.f32 1.0, %v1503_v62  ;;  %v1527_v17 = vmul.f32 0.5, %v3903_v4  ;;  %v1530_v46 = vmul.f32 0.5, %v3904_v5  ;;  %v3918_v58 = vld [vmem:[#allocation22_spill] sm:$0xff]  ;;  %v3919_v4 = vld [vmem:[#allocation25_spill] sm:$0xff]  ;;  %v3920_v5 = vld [vmem:[#allocation24_spill] sm:$0xff] }
 0x29b   : > { %v1576_v54 = vmul.f32 %v1552_v10, %v1528_v55  ;;  %v1506_v57 = vsel %vm1458_vm6, %v1482_v20, %v1434_v32  ;;  %v1409_v7 = vmul.f32 %v3491_v63, %v1289_v19  ;;  %vm1457_vm7 = vcmp.lt.f32.partialorder %v3905_v27, 0.0  ;;  %v3917_v19 = vld [vmem:[#allocation23_spill] sm:$0xff] }
 0x29c   : > { %1709 = vmatmul.mubr.f32.gmra.mrb[18].mxu1 %v1573_v39  ;;  %v1554_v28 = vadd.f32 1.0, %v1506_v57  ;;  %v1575_v21 = vmul.f32 %v1551_v3, %v1527_v17  ;;  %v1529_v22 = vmul.f32 0.5, %v3906_v8  ;;  %v3556_v50 = vrot.slane %v332_v42, %v3907_v18  ;;  %v3923_v18 = vld [vmem:[#allocation30_spill] sm:$0xff] }
 0x29d   : > { %1714 = vmatprep.mubr.f32.mxu1 %v1576_v54  ;;  %v1433_v52 = vsub.f32 1.0, %v1409_v7  ;;  %v3559_v38 = vrot.slane %v332_v42, %v3908_v37 }
 0x29e   : > { %v1578_v9 = vmul.f32 %v1554_v28, %v1530_v46 }
 0x29f   : > { %v1481_v53 = vsub.f32 0.0, %v1433_v52 }
 0x2a0   : > { %1715 = vmatmul.mubr.f32.gmra.mrb[20].mxu1 %v1575_v21 }
 0x2a1   : > { %1720 = vmatprep.mubr.f32.mxu1 %v1578_v9  ;;  %v1505_v43 = vsel %vm1457_vm7, %v1481_v53, %v1433_v52  ;;  %v3921_v53 = vld [vmem:[#allocation27_spill] sm:$0xff] }
 0x2a2   : > { %v1553_v63 = vadd.f32 1.0, %v1505_v43  ;;  %v3922_v43 = vld [vmem:[#allocation26_spill] sm:$0xff] }
 0x2a4   : > { %v1577_v47 = vmul.f32 %v1553_v63, %v1529_v22 }
 0x2a6   : > { %1721 = vmatmul.mubr.f32.gmra.mrb[22].mxu1 %v1577_v47 }
 0x32c   : > { %v1656_v44 = vpop.f32.mrb[0].mxu1 }
 0x32d   : > { %v1657_v56 = vadd.f32 %v1656_v44, %v3556_v50  ;;  %v1658_v31 = vpop.f32.mrb[1].mxu1  ;;  %v3924_v44 = vld [vmem:[#allocation28_spill] sm:$0xff] }
 0x32e   : > { %v1659_v49 = vadd.f32 %v1658_v31, %v3559_v38 }
 0x32f   : > { %v1727_v35 = vadd.f32 %v1657_v56, %v3909_v24 }
 0x330   : > { %v1728_v33 = vadd.f32 %v1659_v49, %v3910_v2  ;;  %v1662_v48 = vpop.f32.mrb[2].mxu1  ;;  %v3925_v2 = vld [vmem:[#allocation32_spill] sm:$0xff] }
 0x331   : > { %1751 = vst [vmem:[%s3567_s3] sm:$0xff] %v1727_v35  ;;  %v1663_v12 = vadd.f32 %v1662_v48, %v3556_v50  ;;  %v1664_v26 = vpop.f32.mrb[3].mxu1  ;;  %v3926_v48 = vld [vmem:[#allocation29_spill] sm:$0xff] }
 0x332   : > { %1752 = vst [vmem:[%s3567_s3 + $0x8] sm:$0xff] %v1728_v33  ;;  %v1665_v16 = vadd.f32 %v1664_v26, %v3559_v38 }
 0x333   : > { %v1729_v13 = vadd.f32 %v1663_v12, %v3911_v11 }
 0x334   : > { %v1730_v15 = vadd.f32 %v1665_v16, %v3912_v41  ;;  %v1668_v51 = vpop.f32.mrb[4].mxu1  ;;  %v3927_v41 = vld [vmem:[#allocation33_spill] sm:$0xff] }
 0x335   : > { %1753 = vst [vmem:[%s3567_s3 + $0x10] sm:$0xff] %v1729_v13  ;;  %v1669_v61 = vadd.f32 %v1668_v51, %v3556_v50  ;;  %v1670_v23 = vpop.f32.mrb[5].mxu1  ;;  %v3928_v51 = vld [vmem:[#allocation31_spill] sm:$0xff] }
 0x336   : > { %1754 = vst [vmem:[%s3567_s3 + $0x18] sm:$0xff] %v1730_v15  ;;  %v1671_v40 = vadd.f32 %v1670_v23, %v3559_v38 }
 0x337   : > { %v1731_v34 = vadd.f32 %v1669_v61, %v3913_v25 }
 0x338   : > { %v1732_v0 = vadd.f32 %v1671_v40, %v3914_v30  ;;  %v1674_v1 = vpop.f32.mrb[6].mxu1  ;;  %v3929_v30 = vld [vmem:[#allocation36_spill] sm:$0xff] }
 0x339   : > { %1755 = vst [vmem:[%s3567_s3 + $0x20] sm:$0xff] %v1731_v34  ;;  %v1675_v32 = vadd.f32 %v1674_v1, %v3556_v50  ;;  %v1676_v60 = vpop.f32.mrb[7].mxu1  ;;  %v3930_v1 = vld [vmem:[#allocation34_spill] sm:$0xff] }
 0x33a   : > { %1756 = vst [vmem:[%s3567_s3 + $0x28] sm:$0xff] %v1732_v0  ;;  %v1677_v14 = vadd.f32 %v1676_v60, %v3559_v38 }
 0x33b   : > { %v1733_v55 = vadd.f32 %v1675_v32, %v3915_v45 }
 0x33c   : > { %v1734_v29 = vadd.f32 %v1677_v14, %v3916_v6  ;;  %v3931_v6 = vld [vmem:[#allocation37_spill] sm:$0xff] }
 0x33d   : > { %1757 = vst [vmem:[%s3567_s3 + $0x30] sm:$0xff] %v1733_v55 }
 0x33e   : > { %1758 = vst [vmem:[%s3567_s3 + $0x38] sm:$0xff] %v1734_v29 }
 0x34c   : > { %v1680_v59 = vpop.f32.mrb[8].mxu1 }
 0x34d   : > { %v1681_v10 = vadd.f32 %v1680_v59, %v3556_v50  ;;  %v1682_v62 = vpop.f32.mrb[9].mxu1  ;;  %v3932_v59 = vld [vmem:[#allocation35_spill] sm:$0xff] }
 0x34e   : > { %v1683_v20 = vadd.f32 %v1682_v62, %v3559_v38 }
 0x34f   : > { %v1735_v36 = vadd.f32 %v1681_v10, %v3917_v19 }
 0x350   : > { %v1736_v39 = vadd.f32 %v1683_v20, %v3918_v58  ;;  %v1686_v3 = vpop.f32.mrb[10].mxu1 }
 0x351   : > { %1759 = vst [vmem:[%s3567_s3 + $0x40] sm:$0xff] %v1735_v36  ;;  %v1687_v54 = vadd.f32 %v1686_v3, %v3556_v50  ;;  %v1688_v57 = vpop.f32.mrb[11].mxu1 }
 0x352   : > { %1760 = vst [vmem:[%s3567_s3 + $0x48] sm:$0xff] %v1736_v39  ;;  %v1689_v7 = vadd.f32 %v1688_v57, %v3559_v38 }
 0x353   : > { %v1737_v17 = vadd.f32 %v1687_v54, %v3919_v4 }
 0x354   : > { %v1738_v46 = vadd.f32 %v1689_v7, %v3920_v5  ;;  %v1692_v28 = vpop.f32.mrb[12].mxu1 }
 0x355   : > { %1761 = vst [vmem:[%s3567_s3 + $0x50] sm:$0xff] %v1737_v17  ;;  %v1693_v52 = vadd.f32 %v1692_v28, %v3556_v50  ;;  %v1694_v21 = vpop.f32.mrb[13].mxu1 }
 0x356   : > { %1762 = vst [vmem:[%s3567_s3 + $0x58] sm:$0xff] %v1738_v46  ;;  %v1695_v9 = vadd.f32 %v1694_v21, %v3559_v38 }
 0x357   : > { %v1739_v27 = vadd.f32 %v1693_v52, %v3921_v53 }
 0x358   : > { %v1740_v8 = vadd.f32 %v1695_v9, %v3922_v43 }
 0x359   : > { %v1698_v22 = vpop.f32.mrb[14].mxu1  ;;  %1763 = vst [vmem:[%s3567_s3 + $0x60] sm:$0xff] %v1739_v27 }
 0x35a   : > { %v1699_v63 = vadd.f32 %v1698_v22, %v3556_v50  ;;  %v1700_v47 = vpop.f32.mrb[15].mxu1  ;;  %1764 = vst [vmem:[%s3567_s3 + $0x68] sm:$0xff] %v1740_v8 }
 0x35b   : > { %v1701_v42 = vadd.f32 %v1700_v47, %v3559_v38 }
 0x35c   : > { %v1741_v37 = vadd.f32 %v1699_v63, %v3923_v18 }
 0x35d   : > { %v1742_v56 = vadd.f32 %v1701_v42, %v3924_v44 }
 0x35e   : > { %1765 = vst [vmem:[%s3567_s3 + $0x70] sm:$0xff] %v1741_v37 }
 0x35f   : > { %1766 = vst [vmem:[%s3567_s3 + $0x78] sm:$0xff] %v1742_v56 }
 0x36b   : > { %v1704_v31 = vpop.f32.mrb[16].mxu1 }
 0x36c   : > { %v1705_v49 = vadd.f32 %v1704_v31, %v3556_v50  ;;  %v1706_v24 = vpop.f32.mrb[17].mxu1 }
 0x36d   : > { %v1707_v35 = vadd.f32 %v1706_v24, %v3559_v38 }
 0x36e   : > { %v1743_v33 = vadd.f32 %v1705_v49, %v3925_v2 }
 0x36f   : > { %v1744_v12 = vadd.f32 %v1707_v35, %v3926_v48  ;;  %v1710_v26 = vpop.f32.mrb[18].mxu1 }
 0x370   : > { %1767 = vst [vmem:[%s3567_s3 + $0x80] sm:$0xff] %v1743_v33  ;;  %v1711_v16 = vadd.f32 %v1710_v26, %v3556_v50  ;;  %v1712_v11 = vpop.f32.mrb[19].mxu1 }
 0x371   : > { %1768 = vst [vmem:[%s3567_s3 + $0x88] sm:$0xff] %v1744_v12  ;;  %v1713_v13 = vadd.f32 %v1712_v11, %v3559_v38 }
 0x372   : > { %v1745_v15 = vadd.f32 %v1711_v16, %v3927_v41 }
 0x373   : > { %v1746_v61 = vadd.f32 %v1713_v13, %v3928_v51  ;;  %v1716_v23 = vpop.f32.mrb[20].mxu1 }
 0x374   : > { %1769 = vst [vmem:[%s3567_s3 + $0x90] sm:$0xff] %v1745_v15  ;;  %v1717_v40 = vadd.f32 %v1716_v23, %v3556_v50  ;;  %v1718_v25 = vpop.f32.mrb[21].mxu1 }
 0x375   : > { %1770 = vst [vmem:[%s3567_s3 + $0x98] sm:$0xff] %v1746_v61  ;;  %v1719_v34 = vadd.f32 %v1718_v25, %v3559_v38 }
 0x376   : > { %v1747_v0 = vadd.f32 %v1717_v40, %v3929_v30 }
 0x377   : > { %v1748_v32 = vadd.f32 %v1719_v34, %v3930_v1 }
 0x378   : > { %1771 = vst [vmem:[%s3567_s3 + $0xa0] sm:$0xff] %v1747_v0 }
 0x379   : > { %1772 = vst [vmem:[%s3567_s3 + $0xa8] sm:$0xff] %v1748_v32  ;;  %v1722_v60 = vpop.f32.mrb[22].mxu1 }
 0x37a   : > { %v1723_v14 = vadd.f32 %v1722_v60, %v3556_v50  ;;  %v1724_v45 = vpop.f32.mrb[23].mxu1 }
 0x37b   : > { %v1725_v55 = vadd.f32 %v1724_v45, %v3559_v38 }
 0x37c   : > { %v1749_v29 = vadd.f32 %v1723_v14, %v3931_v6 }
 0x37d   : > { %v1750_v10 = vadd.f32 %v1725_v55, %v3932_v59 }
 0x37e   : > { %1773 = vst [vmem:[%s3567_s3 + $0xb0] sm:$0xff] %v1749_v29 }
 0x37f   : > { %1774 = vst [vmem:[%s3567_s3 + $0xb8] sm:$0xff] %v1750_v10 }
 0x380   : > { %2322 = shalt.err (!%p2319_p7)
}
 0x381   : > { %s2323_s15 = scalar_lea.hbm %s3639_s20, 3072  ;;  %s2327_s10 = scalar_lea.hbm %s3694_s7, 9216 }
 0x382   : > { %p2324_p9 = scmp.ne.s32.totalorder %s3639_s20, %s2323_s15  ;;  %p2328_p5 = scmp.lt.u32.totalorder %s3639_s20, %s3694_s7 }
 0x383   : > { %p2329_p10 = scmp.lt.u32.totalorder %s2327_s10, %s2323_s15  ;;  %p2331_p2 = scmp.lt.u32.totalorder %s2323_s15, %s3639_s20 }
 0x384   : > { %p2325_p12 = pnand %p2324_p9, %p2547_p6 }
 0x385   : > { %p2330_p1 = por %p2329_p10, %p2328_p5 }
 0x386   : > { %p2326_p0 = pneg %p2325_p12 }
 0x387   : > { %p2332_p4 = por %p2331_p2, %p2330_p1 }
 0x389   : > { %p2333_p8 = pnand %p2332_p4, %p2326_p0 }
 0x38b   : > { %2336 = shalt.err (!%p2333_p8)
}
 0x38c   : > { %s2387_s21 = smov 256   ;;  %s2388_s11 = smov 16  }
 0x38d   : > { %2042 = dma.vmem_to_hbm [thread:$0]  (%p2547_p6), %s3642_s29, 3072, %s3639_s20, %s1776_s28, %s2387_s21, %s2387_s21, %s2388_s11  }
 0x38e PF: > { %p2064_p11 = scmp.ge.s32.totalorder %s2379_s27, 2  ;;  %s1805_s30 = sand.u32 1, %s2367_s24  }
 0x38f   : > { %p3933_p13 = scmp.ne.s32.totalorder %s3766_s8, 0  ;;  %s1806_s9 = scalar_lea.sflag [#allocation4], %s1805_s30 }
 0x391   : > { %p2056_p3 = pnand %p2064_p11, %p3933_p13 }
 0x393   : > { %2362 = dma.done.wait (!%p2056_p3), %s1806_s9, 3072  }
 0x394   : > { %2364 = vsyncadd (!%p2056_p3), %s1806_s9, 4294964224  ;;  %p21_p7 = scmp.ge.s32.totalorder %s2537_s12, 5   ;;  %s3934_s24 = smov %s2371_s25 }
 0x395   : > { %s3935_s25 = smov %s2375_s26  ;;  %s3936_s26 = smov %s2553_s17 }
 0x396   : > { %s3937_s27 = smov %s2537_s12  ;;  %23 = sbr.rel (!%p21_p7) target bundleno = 8 (0x8), region = 101 }
 0x39d   :  { %1811 = vsyncpa [#allocation3], 1 }
 0x39e   :  { %1813 = vsyncpa [#allocation3 + $0x1], 1 }
 0x39f   :  { %1814 = vsyncpa [#allocation6], 1 }
 0x3a0   :  { %1815 = vsyncpa [#allocation4], 1 }
 0x3a1   :  { %1817 = vsyncpa [#allocation4 + $0x1], 1 }

</bundles_post_ra>
